<compile_context>
chip_gen: v7x
topology: tpu7x:2x2x1
jax: 0.10.0
libtpu: 0.0.40
codegen_flags: <defaults>
</compile_context>

<pallas_src>
import math
from functools import partial

import numpy as np
import jax
import jax.numpy as jnp
from jax.experimental import pallas as pl
from jax.experimental.pallas import tpu as pltpu


# ------------------------------------------------------------------ schedule
def cosine_beta_schedule(timesteps, s=0.008):
    steps = timesteps + 1
    x = np.linspace(0, timesteps, steps, dtype=np.float64)
    alphas_cumprod = np.cos((x / timesteps + s) / (1 + s) * np.pi * 0.5) ** 2
    alphas_cumprod = alphas_cumprod / alphas_cumprod[0]
    betas = 1 - alphas_cumprod[1:] / alphas_cumprod[:-1]
    return np.clip(betas, 0, 0.9999)


def make_buffers(timesteps):
    betas = cosine_beta_schedule(timesteps)
    alphas = 1.0 - betas
    alphas_cumprod = np.cumprod(alphas, axis=0)
    alphas_cumprod_prev = np.concatenate([[1.0], alphas_cumprod[:-1]])
    posterior_variance = betas * (1.0 - alphas_cumprod_prev) / (1.0 - alphas_cumprod)
    buf = dict(
        betas=betas,
        alphas_cumprod=alphas_cumprod,
        alphas_cumprod_prev=alphas_cumprod_prev,
        sqrt_alphas_cumprod=np.sqrt(alphas_cumprod),
        sqrt_one_minus_alphas_cumprod=np.sqrt(1.0 - alphas_cumprod),
        log_one_minus_alphas_cumprod=np.log(1.0 - alphas_cumprod),
        sqrt_recip_alphas_cumprod=np.sqrt(1.0 / alphas_cumprod),
        sqrt_recipm1_alphas_cumprod=np.sqrt(1.0 / alphas_cumprod - 1),
        posterior_variance=posterior_variance,
        posterior_log_variance_clipped=np.log(np.clip(posterior_variance, 1e-20, None)),
        posterior_mean_coef1=betas * np.sqrt(alphas_cumprod_prev) / (1.0 - alphas_cumprod),
        posterior_mean_coef2=(1.0 - alphas_cumprod_prev) * np.sqrt(alphas) / (1.0 - alphas_cumprod),
    )
    return {k: jnp.asarray(v, jnp.float32) for k, v in buf.items()}


# ------------------------------------------------------- small tiling helpers
def _pick_tile(dim, cap, quantum):
    """Full extent when small; otherwise the largest multiple of `quantum` <= cap."""
    if dim <= cap:
        return dim
    return max(quantum, (cap // quantum) * quantum)


def _pick_k_tile(k_total, cap=4096):
    """Largest multiple-of-128 divisor of k_total that is <= cap (fallback: k_total)."""
    if k_total <= cap:
        return k_total
    best = None
    for cand in range(128, cap + 1, 128):
        if k_total % cand == 0:
            best = cand
    return best if best is not None else k_total


# ------------------------------------------------- kernel 1: normalize + q_sample
def _q_sample_kernel(a_ref, s_ref, x_ref, noise_ref, out_ref):
    i = pl.program_id(0)                 # batch index
    a = a_ref[i]                         # sqrt(alphas_cumprod)[t_i]       (SMEM scalar)
    s = s_ref[i]                         # sqrt(1 - alphas_cumprod)[t_i]   (SMEM scalar)
    # normalize_img fused:  x_norm = 2*x - 1 ;  x_noisy = a*x_norm + s*noise
    out_ref[...] = a * (x_ref[...] * 2.0 - 1.0) + s * noise_ref[...]


def q_sample_normalized(x, noise, sqrt_ac_t, sqrt_om_t, *, row_cap=512, lane_cap=2048):
    b, c, f, h, w = x.shape
    R, L = c * f, h * w
    x2 = x.reshape(b, R, L)
    n2 = noise.reshape(b, R, L)
    tr = _pick_tile(R, row_cap, 8)       # sublane tile (multiple of 8 or full extent)
    tl = _pick_tile(L, lane_cap, 128)    # lane tile    (multiple of 128 or full extent)
    grid = (b, pl.cdiv(R, tr), pl.cdiv(L, tl))
    n_elem = b * R * L
    out = pl.pallas_call(
        _q_sample_kernel,
        grid=grid,
        in_specs=[
            pl.BlockSpec(memory_space=pltpu.MemorySpace.SMEM),        # per-batch coef a
            pl.BlockSpec(memory_space=pltpu.MemorySpace.SMEM),        # per-batch coef s
            pl.BlockSpec((None, tr, tl), lambda i, j, k: (i, j, k)),  # x   (squeezed lead)
            pl.BlockSpec((None, tr, tl), lambda i, j, k: (i, j, k)),  # noise
        ],
        out_specs=pl.BlockSpec((None, tr, tl), lambda i, j, k: (i, j, k)),
        out_shape=jax.ShapeDtypeStruct((b, R, L), x.dtype),
        compiler_params=pltpu.CompilerParams(
            dimension_semantics=("parallel", "parallel", "parallel"),
            vmem_limit_bytes=48 * 1024 * 1024,   # safe on v5e/v6e, < v7x 64 MiB physical
        ),
        cost_estimate=pl.CostEstimate(
            flops=4 * n_elem, transcendentals=0,
            bytes_accessed=3 * n_elem * 4 + 2 * b * 4),
    )(sqrt_ac_t, sqrt_om_t, x2, n2)
    return out.reshape(b, c, f, h, w)


# ---------------------------------------------- kernel 2: Conv3d as K-tiled MXU matmul
def _convert_cond_kernel(x_ref, w_ref, b_ref, o_ref, acc_ref):
    k = pl.program_id(0)

    @pl.when(k == 0)
    def _():
        acc_ref[...] = b_ref[...]        # init accumulator with (broadcast) bias

    acc_ref[...] += jnp.dot(x_ref[...], w_ref[...], preferred_element_type=jnp.float32)

    @pl.when(k == pl.num_programs(0) - 1)
    def _():
        o_ref[...] = acc_ref[...]


def convert_cond(cond4, w_flat_pad, b_pad, n_out_valid):
    # cond4: (4, 11, 4, 24, 24); kernel covers full extent -> (4, 44, 1, 1, 1) -> (4, 44)
    n = cond4.shape[0]
    k_total, n_pad = w_flat_pad.shape    # (25344, 128)
    m_pad = b_pad.shape[0]               # 8
    x_flat = cond4.reshape(n, k_total)   # row-major over (ic, kd, kh, kw) = torch layout
    x_pad = jnp.zeros((m_pad, k_total), jnp.float32).at[:n].set(x_flat)
    tk = _pick_k_tile(k_total)
    nk = k_total // tk
    out = pl.pallas_call(
        _convert_cond_kernel,
        grid=(nk,),
        in_specs=[
            pl.BlockSpec((m_pad, tk), lambda k: (0, k)),     # activation slab
            pl.BlockSpec((tk, n_pad), lambda k: (k, 0)),     # weight slab (double-buffered)
            pl.BlockSpec((m_pad, n_pad), lambda k: (0, 0)),  # bias (resident)
        ],
        out_specs=pl.BlockSpec((m_pad, n_pad), lambda k: (0, 0)),
        out_shape=jax.ShapeDtypeStruct((m_pad, n_pad), jnp.float32),
        scratch_shapes=[pltpu.VMEM((m_pad, n_pad), jnp.float32)],
        compiler_params=pltpu.CompilerParams(
            dimension_semantics=("arbitrary",),              # reduction axis
            vmem_limit_bytes=48 * 1024 * 1024,
        ),
        cost_estimate=pl.CostEstimate(
            flops=2 * m_pad * k_total * n_pad, transcendentals=0,
            bytes_accessed=(m_pad * k_total + k_total * n_pad + 2 * m_pad * n_pad) * 4),
    )(x_pad, w_flat_pad, b_pad)
    return out[:n, :n_out_valid]


# ----------------------------------------------------- kernel 3: tiled L1 loss reduce
def _l1_loss_kernel(a_ref, b_ref, o_ref, acc_ref, *, nrows, ncols, tr, tl, inv_n):
    i = pl.program_id(0)
    j = pl.program_id(1)

    @pl.when(jnp.logical_and(i == 0, j == 0))
    def _():
        acc_ref[...] = jnp.zeros_like(acc_ref)

    # explicit f32 accumulation (robust if inputs ever become bf16)
    d = jnp.abs(a_ref[...].astype(jnp.float32) - b_ref[...].astype(jnp.float32))
    if (nrows % tr != 0) or (ncols % tl != 0):
        row_ids = jax.lax.broadcasted_iota(jnp.int32, (tr, tl), 0) + i * tr
        col_ids = jax.lax.broadcasted_iota(jnp.int32, (tr, tl), 1) + j * tl
        d = jnp.where((row_ids < nrows) & (col_ids < ncols), d, 0.0)
    acc_ref[...] += jnp.sum(d, keepdims=True)

    @pl.when(jnp.logical_and(i == pl.num_programs(0) - 1,
                             j == pl.num_programs(1) - 1))
    def _():
        o_ref[...] = acc_ref[...] * inv_n


def l1_loss(a, b, *, row_cap=512, lane_cap=2048):
    nrows = a.shape[0] * a.shape[1] * a.shape[2]
    ncols = a.shape[3] * a.shape[4]
    a2 = a.reshape(nrows, ncols)
    b2 = b.reshape(nrows, ncols)
    tr = _pick_tile(nrows, row_cap, 8)
    tl = _pick_tile(ncols, lane_cap, 128)
    grid = (pl.cdiv(nrows, tr), pl.cdiv(ncols, tl))
    n_elem = nrows * ncols
    kern = partial(_l1_loss_kernel, nrows=nrows, ncols=ncols, tr=tr, tl=tl,
                   inv_n=1.0 / float(n_elem))
    out = pl.pallas_call(
        kern,
        grid=grid,
        in_specs=[pl.BlockSpec((tr, tl), lambda i, j: (i, j)),
                  pl.BlockSpec((tr, tl), lambda i, j: (i, j))],
        out_specs=pl.BlockSpec((1, 1), lambda i, j: (0, 0)),
        out_shape=jax.ShapeDtypeStruct((1, 1), jnp.float32),
        scratch_shapes=[pltpu.VMEM((1, 1), jnp.float32)],
        compiler_params=pltpu.CompilerParams(
            dimension_semantics=("arbitrary", "arbitrary"),
            vmem_limit_bytes=48 * 1024 * 1024,
        ),
        cost_estimate=pl.CostEstimate(
            flops=3 * n_elem, transcendentals=0, bytes_accessed=2 * n_elem * 4 + 4),
    )(a2, b2)
    return out[0, 0]


# ------------------------------------------------------------- synthetic denoiser
# TODO(synk): denoise_fn is an externally injected network (Unet3D); it is not part
# of this module's definition, so use a deterministic synthetic stand-in with the
# same signature / shapes (x_noisy, t, cond(4,44)) -> same shape as x_noisy.
def synthetic_denoise_fn(x_noisy, t, cond, num_timesteps):
    tt = (t.astype(jnp.float32) / float(num_timesteps)).reshape(-1, 1, 1, 1, 1)
    c = jnp.mean(cond)
    return jnp.tanh(x_noisy) * (1.0 - tt) + c * tt


# --------------------------------------------------------------- module wrapper
class GaussianDiffusionPallas:
    def __init__(self, *, image_size, num_frames, channels=4, timesteps=1000,
                 loss_type="l1"):
        self.image_size = image_size
        self.num_frames = num_frames
        self.channels = channels
        self.num_timesteps = int(timesteps)
        self.loss_type = loss_type
        self.buffers = make_buffers(timesteps)

        # frozen Conv3d(11 -> 44, kernel (4,24,24)) params, torch-default-style init
        key = jax.random.PRNGKey(0)
        kw, kb = jax.random.split(key)
        self.conv_oc = 44
        self.conv_k = 11 * 4 * 24 * 24
        bound = 1.0 / math.sqrt(self.conv_k)
        conv_w = jax.random.uniform(kw, (self.conv_oc, 11, 4, 24, 24), jnp.float32,
                                    minval=-bound, maxval=bound)
        conv_b = jax.random.uniform(kb, (self.conv_oc,), jnp.float32,
                                    minval=-bound, maxval=bound)

        # Hoisted, pre-laid-out matmul operands (computed once; weight is frozen):
        #   weight: (oc, K) -> transpose -> zero-pad lanes 44 -> 128
        #   bias:   zero-pad to 128 lanes, replicate to 8 sublanes (padded M)
        self.n_pad = 128
        self.m_pad = 8
        w_flat = jnp.transpose(conv_w.reshape(self.conv_oc, self.conv_k))  # (K, 44)
        self.w_flat_pad = jnp.zeros((self.conv_k, self.n_pad), jnp.float32
                                    ).at[:, :self.conv_oc].set(w_flat)
        b_row = jnp.zeros((self.n_pad,), jnp.float32).at[:self.conv_oc].set(conv_b)
        self.b_pad = jnp.tile(b_row[None, :], (self.m_pad, 1))

        # single jit over the whole forward: fuses the surrounding XLA ops and
        # removes per-pallas_call dispatch overhead.
        self._forward_jit = jax.jit(self._forward)

    def _forward(self, x, cond, t, noise):
        b, c, f, h, w = x.shape

        origin_cond = cond

        # torch: repeat / pad cond batch to 4 before convert_cond
        if cond.shape[0] != 4:
            if cond.shape[0] in (1, 2):
                cond4 = jnp.tile(cond, (4 // cond.shape[0], 1, 1, 1, 1))
            else:
                cond4 = jnp.concatenate([cond, cond[:1]], axis=0)
        else:
            cond4 = cond
        cond_feat = convert_cond(cond4, self.w_flat_pad, self.b_pad, self.conv_oc)  # (4, 44)

        # ---------------- p_losses ----------------
        sqrt_ac_t = self.buffers["sqrt_alphas_cumprod"][t]                 # (b,)
        sqrt_om_t = self.buffers["sqrt_one_minus_alphas_cumprod"][t]       # (b,)
        x_noisy = q_sample_normalized(x, noise, sqrt_ac_t, sqrt_om_t)      # fused 2x-1 + q_sample

        # TODO(synk): sklearn-KMeans hypergraph construction + dhg HGNN have no Pallas
        # equivalent; reuse the frozen Conv3d(convert_cond) features as `outs` (4, 44).
        del origin_cond
        outs = cond_feat

        x_recon = synthetic_denoise_fn(x_noisy, t, outs, self.num_timesteps)

        if self.loss_type == "l1":
            loss = l1_loss(noise, x_recon)
        elif self.loss_type == "l2":
            loss = jnp.mean((noise - x_recon) ** 2)
        else:
            raise NotImplementedError()
        return loss

    def forward(self, x, cond, t, noise):
        b, c, f, h, w = x.shape
        assert c == self.channels and f == self.num_frames
        assert h == self.image_size and w == self.image_size
        return self._forward_jit(x, cond, t, noise)


# ------------------------------------------------------------------------ main
if __name__ == "__main__":
    B, C, F, H = 2, 4, 4, 16           # batch, channels, num_frames, image_size
    T = 1000

    gd = GaussianDiffusionPallas(image_size=H, num_frames=F, channels=C, timesteps=T)

    key = jax.random.PRNGKey(0)
    kx, kc, kt, kn = jax.random.split(key, 4)
    x = jax.random.uniform(kx, (B, C, F, H, H), jnp.float32)                 # in [0, 1]
    cond = jax.random.normal(kc, (B, 11, 4, 24, 24), jnp.float32)
    t = jax.random.randint(kt, (B,), 0, T, dtype=jnp.int32)                  # torch.randint(0, T, (b,))
    noise = jax.random.normal(kn, (B, C, F, H, H), jnp.float32)

    loss = gd.forward(x, cond, t, noise)
    loss = jax.block_until_ready(loss)
    assert loss.shape == () and jnp.isfinite(loss)
    print("KERNEL_OK")
</pallas_src>

<mosaic_0001>
module attributes {stable_mosaic.version = 11 : i64} {
  func.func @_q_sample_kernel(%arg0: i32, %arg1: i32, %arg2: i32, %arg3: memref<2xf32, #tpu.memory_space<smem>>, %arg4: memref<2xf32, #tpu.memory_space<smem>>, %arg5: memref<1x16x256xf32, #tpu.memory_space<vmem>>, %arg6: memref<1x16x256xf32, #tpu.memory_space<vmem>>, %arg7: memref<1x16x256xf32, #tpu.memory_space<vmem>>) attributes {dimension_semantics = [#tpu.dimension_semantics<parallel>, #tpu.dimension_semantics<parallel>, #tpu.dimension_semantics<parallel>], iteration_bounds = array<i64: 2, 1, 1>, scalar_prefetch = 0 : i64, scratch_operands = 0 : i64, tpu.core_type = #tpu.core_type<tc>, window_params = [{transform_indices = @transform_0, window_bounds = array<i64: 2>}, {transform_indices = @transform_1, window_bounds = array<i64: 2>}, {transform_indices = @transform_2, window_bounds = array<i64: 1, 16, 256>}, {transform_indices = @transform_3, window_bounds = array<i64: 1, 16, 256>}, {transform_indices = @transform_4, window_bounds = array<i64: 1, 16, 256>}]} {
    %0 = arith.index_cast %arg0 : i32 to index
    %1 = memref.load %arg3[%0] : memref<2xf32, #tpu.memory_space<smem>>
    %2 = arith.index_cast %arg0 : i32 to index
    %3 = memref.load %arg4[%2] : memref<2xf32, #tpu.memory_space<smem>>
    %c0 = arith.constant 0 : index
    %c0_0 = arith.constant 0 : index
    %c0_1 = arith.constant 0 : index
    %4 = vector.load %arg5[%c0, %c0_0, %c0_1] : memref<1x16x256xf32, #tpu.memory_space<vmem>>, vector<1x16x256xf32>
    %5 = vector.shape_cast %4 : vector<1x16x256xf32> to vector<16x256xf32>
    %cst = arith.constant 2.000000e+00 : f32
    %6 = vector.broadcast %cst : f32 to vector<16x256xf32>
    %7 = arith.mulf %5, %6 : vector<16x256xf32>
    %cst_2 = arith.constant 1.000000e+00 : f32
    %8 = vector.broadcast %cst_2 : f32 to vector<16x256xf32>
    %9 = arith.subf %7, %8 : vector<16x256xf32>
    %10 = vector.broadcast %1 : f32 to vector<16x256xf32>
    %11 = arith.mulf %10, %9 : vector<16x256xf32>
    %c0_3 = arith.constant 0 : index
    %c0_4 = arith.constant 0 : index
    %c0_5 = arith.constant 0 : index
    %12 = vector.load %arg6[%c0_3, %c0_4, %c0_5] : memref<1x16x256xf32, #tpu.memory_space<vmem>>, vector<1x16x256xf32>
    %13 = vector.shape_cast %12 : vector<1x16x256xf32> to vector<16x256xf32>
    %14 = vector.broadcast %3 : f32 to vector<16x256xf32>
    %15 = arith.mulf %14, %13 : vector<16x256xf32>
    %16 = arith.addf %11, %15 : vector<16x256xf32>
    %c0_6 = arith.constant 0 : index
    %c0_7 = arith.constant 0 : index
    %c0_8 = arith.constant 0 : index
    %17 = vector.load %arg7[%c0_6, %c0_7, %c0_8] : memref<1x16x256xf32, #tpu.memory_space<vmem>>, vector<1x16x256xf32>
    %18 = vector.shape_cast %17 : vector<1x16x256xf32> to vector<16x256xf32>
    %19 = vector.shape_cast %16 : vector<16x256xf32> to vector<1x16x256xf32>
    tpu.vector_store %arg7[%c0_6, %c0_7, %c0_8], %19 {strides = array<i32>} : memref<1x16x256xf32, #tpu.memory_space<vmem>>, vector<1x16x256xf32>,
    return
  }
  func.func @transform_0(%arg0: i32, %arg1: i32, %arg2: i32) -> i32 {
    %c0_i32 = arith.constant 0 : i32
    %c0_i32_0 = arith.constant 0 : i32
    return %c0_i32 : i32
  }
  func.func @transform_1(%arg0: i32, %arg1: i32, %arg2: i32) -> i32 {
    %c0_i32 = arith.constant 0 : i32
    %c0_i32_0 = arith.constant 0 : i32
    return %c0_i32 : i32
  }
  func.func @transform_2(%arg0: i32, %arg1: i32, %arg2: i32) -> (i32, i32, i32) {
    %c0_i32 = arith.constant 0 : i32
    return %arg0, %arg1, %arg2 : i32, i32, i32
  }
  func.func @transform_3(%arg0: i32, %arg1: i32, %arg2: i32) -> (i32, i32, i32) {
    %c0_i32 = arith.constant 0 : i32
    return %arg0, %arg1, %arg2 : i32, i32, i32
  }
  func.func @transform_4(%arg0: i32, %arg1: i32, %arg2: i32) -> (i32, i32, i32) {
    %c0_i32 = arith.constant 0 : i32
    return %arg0, %arg1, %arg2 : i32, i32, i32
  }
}

module attributes {stable_mosaic.version = 11 : i64} {
  func.func @_convert_cond_kernel(%arg0: i32, %arg1: memref<8x2816xf32, #tpu.memory_space<vmem>>, %arg2: memref<2816x128xf32, #tpu.memory_space<vmem>>, %arg3: memref<8x128xf32, #tpu.memory_space<vmem>>, %arg4: memref<8x128xf32, #tpu.memory_space<vmem>>, %arg5: memref<8x128xf32, #tpu.memory_space<vmem>>) attributes {dimension_semantics = [#tpu.dimension_semantics<arbitrary>], iteration_bounds = array<i64: 9>, scalar_prefetch = 0 : i64, scratch_operands = 1 : i64, tpu.core_type = #tpu.core_type<tc>, window_params = [{transform_indices = @transform_0, window_bounds = array<i64: 8, 2816>}, {transform_indices = @transform_1, window_bounds = array<i64: 2816, 128>}, {pipeline_mode = #tpu.pipeline_mode<synchronous>, transform_indices = @transform_2, window_bounds = array<i64: 8, 128>}, {pipeline_mode = #tpu.pipeline_mode<synchronous>, transform_indices = @transform_3, window_bounds = array<i64: 8, 128>}]} {
    %c0_i32 = arith.constant 0 : i32
    %0 = arith.cmpi eq, %arg0, %c0_i32 : i32
    %1 = arith.extui %0 : i1 to i32
    %c0_i32_0 = arith.constant 0 : i32
    %2 = arith.cmpi ne, %1, %c0_i32_0 : i32
    scf.if %2 {
      %c0_9 = arith.constant 0 : index
      %c0_10 = arith.constant 0 : index
      %12 = vector.load %arg3[%c0_9, %c0_10] : memref<8x128xf32, #tpu.memory_space<vmem>>, vector<8x128xf32>
      %c0_11 = arith.constant 0 : index
      %c0_12 = arith.constant 0 : index
      %13 = vector.load %arg5[%c0_11, %c0_12] : memref<8x128xf32, #tpu.memory_space<vmem>>, vector<8x128xf32>
      tpu.vector_store %arg5[%c0_11, %c0_12], %12 {strides = array<i32>} : memref<8x128xf32, #tpu.memory_space<vmem>>, vector<8x128xf32>,
    } else {
    }
    %c0 = arith.constant 0 : index
    %c0_1 = arith.constant 0 : index
    %3 = vector.load %arg5[%c0, %c0_1] : memref<8x128xf32, #tpu.memory_space<vmem>>, vector<8x128xf32>
    %c0_2 = arith.constant 0 : index
    %c0_3 = arith.constant 0 : index
    %4 = vector.load %arg1[%c0_2, %c0_3] : memref<8x2816xf32, #tpu.memory_space<vmem>>, vector<8x2816xf32>
    %c0_4 = arith.constant 0 : index
    %c0_5 = arith.constant 0 : index
    %5 = vector.load %arg2[%c0_4, %c0_5] : memref<2816x128xf32, #tpu.memory_space<vmem>>, vector<2816x128xf32>
    %cst = arith.constant dense<0.000000e+00> : vector<8x128xf32>
    %6 = tpu.matmul %4, %5, %cst {dimension_numbers = #tpu.dot_dimension_numbers<[1], [0], [0], [1], [0, 0, 1, 1], [], []>} : vector<8x2816xf32>, vector<2816x128xf32>, vector<8x128xf32> -> vector<8x128xf32>
    %7 = arith.addf %3, %6 : vector<8x128xf32>
    %c0_6 = arith.constant 0 : index
    %c0_7 = arith.constant 0 : index
    %8 = vector.load %arg5[%c0_6, %c0_7] : memref<8x128xf32, #tpu.memory_space<vmem>>, vector<8x128xf32>
    tpu.vector_store %arg5[%c0_6, %c0_7], %7 {strides = array<i32>} : memref<8x128xf32, #tpu.memory_space<vmem>>, vector<8x128xf32>,
    %c8_i32 = arith.constant 8 : i32
    %9 = arith.cmpi eq, %arg0, %c8_i32 : i32
    %10 = arith.extui %9 : i1 to i32
    %c0_i32_8 = arith.constant 0 : i32
    %11 = arith.cmpi ne, %10, %c0_i32_8 : i32
    scf.if %11 {
      %c0_9 = arith.constant 0 : index
      %c0_10 = arith.constant 0 : index
      %12 = vector.load %arg5[%c0_9, %c0_10] : memref<8x128xf32, #tpu.memory_space<vmem>>, vector<8x128xf32>
      %c0_11 = arith.constant 0 : index
      %c0_12 = arith.constant 0 : index
      %13 = vector.load %arg4[%c0_11, %c0_12] : memref<8x128xf32, #tpu.memory_space<vmem>>, vector<8x128xf32>
      tpu.vector_store %arg4[%c0_11, %c0_12], %12 {strides = array<i32>} : memref<8x128xf32, #tpu.memory_space<vmem>>, vector<8x128xf32>,
    } else {
    }
    return
  }
  func.func @transform_0(%arg0: i32) -> (i32, i32) {
    %c0_i32 = arith.constant 0 : i32
    %c0_i32_0 = arith.constant 0 : i32
    return %c0_i32, %arg0 : i32, i32
  }
  func.func @transform_1(%arg0: i32) -> (i32, i32) {
    %c0_i32 = arith.constant 0 : i32
    %c0_i32_0 = arith.constant 0 : i32
    return %arg0, %c0_i32 : i32, i32
  }
  func.func @transform_2(%arg0: i32) -> (i32, i32) {
    %c0_i32 = arith.constant 0 : i32
    %c0_i32_0 = arith.constant 0 : i32
    %c0_i32_1 = arith.constant 0 : i32
    return %c0_i32, %c0_i32_0 : i32, i32
  }
  func.func @transform_3(%arg0: i32) -> (i32, i32) {
    %c0_i32 = arith.constant 0 : i32
    %c0_i32_0 = arith.constant 0 : i32
    %c0_i32_1 = arith.constant 0 : i32
    return %c0_i32, %c0_i32_0 : i32, i32
  }
}

module attributes {stable_mosaic.version = 11 : i64} {
  func.func @_l1_loss_kernel(%arg0: i32, %arg1: i32, %arg2: memref<32x256xf32, #tpu.memory_space<vmem>>, %arg3: memref<32x256xf32, #tpu.memory_space<vmem>>, %arg4: memref<1x1xf32, #tpu.memory_space<vmem>>, %arg5: memref<1x1xf32, #tpu.memory_space<vmem>>) attributes {dimension_semantics = [#tpu.dimension_semantics<arbitrary>, #tpu.dimension_semantics<arbitrary>], iteration_bounds = array<i64: 1, 1>, scalar_prefetch = 0 : i64, scratch_operands = 1 : i64, tpu.core_type = #tpu.core_type<tc>, window_params = [{transform_indices = @transform_0, window_bounds = array<i64: 32, 256>}, {transform_indices = @transform_1, window_bounds = array<i64: 32, 256>}, {pipeline_mode = #tpu.pipeline_mode<synchronous>, transform_indices = @transform_2, window_bounds = array<i64: 1, 1>}]} {
    %c0_i32 = arith.constant 0 : i32
    %0 = arith.cmpi eq, %arg0, %c0_i32 : i32
    %c0_i32_0 = arith.constant 0 : i32
    %1 = arith.cmpi eq, %arg1, %c0_i32_0 : i32
    %2 = arith.andi %0, %1 : i1
    %3 = arith.extui %2 : i1 to i32
    %c0_i32_1 = arith.constant 0 : i32
    %4 = arith.cmpi ne, %3, %c0_i32_1 : i32
    scf.if %4 {
      %cst_12 = arith.constant 0.000000e+00 : f32
      %22 = vector.broadcast %cst_12 : f32 to vector<1x1xf32>
      %c0_13 = arith.constant 0 : index
      %c0_14 = arith.constant 0 : index
      %23 = vector.load %arg5[%c0_13, %c0_14] : memref<1x1xf32, #tpu.memory_space<vmem>>, vector<1x1xf32>
      tpu.vector_store %arg5[%c0_13, %c0_14], %22 {strides = array<i32>} : memref<1x1xf32, #tpu.memory_space<vmem>>, vector<1x1xf32>,
    } else {
    }
    %c0 = arith.constant 0 : index
    %c0_2 = arith.constant 0 : index
    %5 = vector.load %arg2[%c0, %c0_2] : memref<32x256xf32, #tpu.memory_space<vmem>>, vector<32x256xf32>
    %c0_3 = arith.constant 0 : index
    %c0_4 = arith.constant 0 : index
    %6 = vector.load %arg3[%c0_3, %c0_4] : memref<32x256xf32, #tpu.memory_space<vmem>>, vector<32x256xf32>
    %7 = arith.subf %5, %6 : vector<32x256xf32>
    %8 = math.absf %7 : vector<32x256xf32>
    %c0_5 = arith.constant 0 : index
    %c0_6 = arith.constant 0 : index
    %9 = vector.load %arg5[%c0_5, %c0_6] : memref<1x1xf32, #tpu.memory_space<vmem>>, vector<1x1xf32>
    %10 = vector.shape_cast %8 : vector<32x256xf32> to vector<1x32x256xf32>
    %cst = arith.constant dense<0.000000e+00> : vector<1xf32>
    %11 = vector.multi_reduction <add>, %10, %cst [1, 2] : vector<1x32x256xf32> to vector<1xf32>
    %12 = vector.shape_cast %11 : vector<1xf32> to vector<1x1x1xf32>
    %13 = vector.extract %12[0, 0, 0] : f32 from vector<1x1x1xf32>
    %14 = vector.broadcast %13 : f32 to vector<1x1xf32>
    %15 = arith.addf %9, %14 : vector<1x1xf32>
    %c0_7 = arith.constant 0 : index
    %c0_8 = arith.constant 0 : index
    %16 = vector.load %arg5[%c0_7, %c0_8] : memref<1x1xf32, #tpu.memory_space<vmem>>, vector<1x1xf32>
    tpu.vector_store %arg5[%c0_7, %c0_8], %15 {strides = array<i32>} : memref<1x1xf32, #tpu.memory_space<vmem>>, vector<1x1xf32>,
    %c0_i32_9 = arith.constant 0 : i32
    %17 = arith.cmpi eq, %arg0, %c0_i32_9 : i32
    %c0_i32_10 = arith.constant 0 : i32
    %18 = arith.cmpi eq, %arg1, %c0_i32_10 : i32
    %19 = arith.andi %17, %18 : i1
    %20 = arith.extui %19 : i1 to i32
    %c0_i32_11 = arith.constant 0 : i32
    %21 = arith.cmpi ne, %20, %c0_i32_11 : i32
    scf.if %21 {
      %c0_12 = arith.constant 0 : index
      %c0_13 = arith.constant 0 : index
      %22 = vector.load %arg5[%c0_12, %c0_13] : memref<1x1xf32, #tpu.memory_space<vmem>>, vector<1x1xf32>
      %cst_14 = arith.constant 1.22070313E-4 : f32
      %23 = vector.broadcast %cst_14 : f32 to vector<1x1xf32>
      %24 = arith.mulf %22, %23 : vector<1x1xf32>
      %c0_15 = arith.constant 0 : index
      %c0_16 = arith.constant 0 : index
      %25 = vector.load %arg4[%c0_15, %c0_16] : memref<1x1xf32, #tpu.memory_space<vmem>>, vector<1x1xf32>
      tpu.vector_store %arg4[%c0_15, %c0_16], %24 {strides = array<i32>} : memref<1x1xf32, #tpu.memory_space<vmem>>, vector<1x1xf32>,
    } else {
    }
    return
  }
  func.func @transform_0(%arg0: i32, %arg1: i32) -> (i32, i32) {
    %c0_i32 = arith.constant 0 : i32
    return %arg0, %arg1 : i32, i32
  }
  func.func @transform_1(%arg0: i32, %arg1: i32) -> (i32, i32) {
    %c0_i32 = arith.constant 0 : i32
    return %arg0, %arg1 : i32, i32
  }
  func.func @transform_2(%arg0: i32, %arg1: i32) -> (i32, i32) {
    %c0_i32 = arith.constant 0 : i32
    %c0_i32_0 = arith.constant 0 : i32
    %c0_i32_1 = arith.constant 0 : i32
    return %c0_i32, %c0_i32_0 : i32, i32
  }
}

</mosaic_0001>

<bundles_post_ra>
// kernel: _forward.4
= control target key start
LH: loop header
LB: loop body
LE: loop exit
PB: predicated region body
PF: predicated region fallthrough
CT: control target
= control target key end

     0   :  { %9 = vsyncpa [#allocation3], 0  ;;  %s794_s0 = inlined_call_operand.vmem [shape: f32[2], index: 0, kind: input, shape index: {}]   ;;  %s795_s1 = inlined_call_operand.vmem [shape: f32[2], index: 1, kind: input, shape index: {}]   ;;  %s796_s2 = inlined_call_operand.vmem [shape: f32[2,16,256], index: 2, kind: input, shape index: {}]   ;;  %s797_s3 = inlined_call_operand.vmem [shape: f32[2,16,256], index: 3, kind: input, shape index: {}]   ;;  %s798_s4 = inlined_call_operand.vmem [shape: f32[2,16,256], index: 4, kind: output, shape index: {}]  }
   0x1   :  { %10 = vsyncpa [#allocation5], 0  ;;  %s713_s15 = smov 0   ;;  %s715_s16 = smov 0  }
   0x2   :  { %s717_s17 = smov 0  }
   0x3 LB: > { %s555_s18 = sadd.s32 4294967295, %s684_s17   ;;  %s35_s19 = sadd.s32 1, %s680_s16  ;;  %s684_s17 = sphi %s717_s17, %s16_s17   ;;  %s680_s16 = sphi %s715_s16, %s808_s16   ;;  %s676_s15 = sphi %s713_s15, %s807_s15  }
   0x4   : > { %p37_p0 = scmp.ge.s32.totalorder %s35_s19, 2  ;;  %p557_p1 = scmp.ge.s32.totalorder %s684_s17, 1 }
   0x5   : > { %p172_p2 = scmp.lt.s32.totalorder %s684_s17, 3  ;;  %p738_p4 = scmp.eq.s32.totalorder %s555_s18, 0 }
   0x6   : > { %s810_s19 = smov (%p37_p0, %s35_s19), 0  ;;  %s185_s24 = sshll.u32 %s794_s0, 4  ;;  %s186_s24 = int_to_ptr.vmem [resolvable:$true] %s185_s24 }
   0x7   : > { %p734_p3 = pnand %p557_p1, %p172_p2  ;;  %s196_s27 = sshll.u32 %s795_s1, 4  ;;  %s197_s27 = int_to_ptr.vmem [resolvable:$true] %s196_s27 }
   0x8   : > { %s803_s21 = scalar_select %p738_p4, 1, 0 }
   0x9   : > { %s802_s20 = scalar_select %p734_p3, 1, 0 }
   0xa   : > { %p587_p5 = pneg %p734_p3  ;;  %s624_s29 = scalar_lea.vmem %s186_s24, 16 }
   0xb   : > { %p625_p7 = scmp.ne.s32.totalorder %s186_s24, %s624_s29  ;;  %p632_p11 = scmp.lt.s32.totalorder %s186_s24, %s186_s24 }
   0xc   : > { %p752_p6 = pnand %p738_p4, %p587_p5  ;;  %p633_p12 = scmp.lt.s32.totalorder %s624_s29, %s624_s29 }
   0xe   : > { %p626_p8 = pneg %p752_p6  ;;  %p634_p13 = por %p633_p12, %p632_p11 }
  0x10   : > { %p627_p9 = pnand %p626_p8, %p625_p7 }
  0x12   : > { %p628_p10 = pneg %p627_p9 }
  0x14   : > { %p635_p0 = pnand %p634_p13, %p628_p10 }
  0x16   : > { %638 = shalt.err (!%p635_p0)
}
  0x17   : > { %s686_s30 = smov [#allocation2]   ;;  %s639_s5 = scalar_lea.vmem %s197_s27, 16 }
  0x18   : > { %590 = dma.vmem_to_smem (!%p752_p6), %s186_s24, 16, %s686_s30, [#allocation3]  }
  0x19   : > { %p640_p1 = scmp.ne.s32.totalorder %s197_s27, %s639_s5  ;;  %p647_p4 = scmp.lt.s32.totalorder %s197_s27, %s197_s27 }
  0x1a   : > { %p648_p3 = scmp.lt.s32.totalorder %s639_s5, %s639_s5 }
  0x1b   : > { %p642_p2 = pnand %p640_p1, %p626_p8 }
  0x1c   : > { %p649_p7 = por %p648_p3, %p647_p4 }
  0x1d   : > { %p643_p5 = pneg %p642_p2 }
  0x1f   : > { %p650_p9 = pnand %p649_p7, %p643_p5 }
  0x21   : > { %653 = shalt.err (!%p650_p9)
}
  0x22   : > { %s687_s6 = smov [#allocation4]   ;;  %p805_p10 = scmp.ne.s32.totalorder %s802_s20, 0 }
  0x23   : > { %593 = dma.vmem_to_smem (!%p752_p6), %s197_s27, 16, %s687_s6, [#allocation5]  }
  0x24   : > { %247 = sbr.rel (%p805_p10) target bundleno = 66 (0x42), region = 36  ;;  %p806_p11 = scmp.ne.s32.totalorder (!%p805_p10), %s803_s21, 0 }
  0x2b   : > { %667 = dma.done.wait (%p806_p11), [#allocation3], 16  }
  0x2c   : > { %669 = vsyncadd (%p806_p11), [#allocation3], 4294967280 }
  0x2d   : > { %671 = dma.done.wait (%p806_p11), [#allocation5], 16  }
  0x2e   : > { %673 = vsyncadd (%p806_p11), [#allocation5], 4294967280 }
  0x2f   : > { %257 = sfence }
  0x30   : > { %p312_p3 = scmp.lt.s32.totalorder %s676_s15, 1  ;;  %s358_s7 = sld [smem:[#allocation2 + %s676_s15]] }
  0x31   : > { %s359_s8 = sld [smem:[#allocation4 + %s676_s15]] }
  0x32   : > { %s812_s15 = smov (!%p312_p3, %s676_s15), 1 }
  0x33   : > { %s576_s9 = sshll.u32 %s812_s15, 5 }
  0x34   : > { %s323_s12 = scalar_lea.vmem %s796_s2, %s576_s9  ;;  %s339_s18 = scalar_lea.vmem %s797_s3, %s576_s9 }
  0x35   : > { %v360_v0 = vld [vmem:[%s323_s12] sm:$0xff]  ;;  %v361_v2 = vld [vmem:[%s323_s12 + $0x8] sm:$0xff]  ;;  %v362_v7 = vld [vmem:[%s323_s12 + $0x10] sm:$0xff]  ;;  %s355_s21 = scalar_lea.vmem %s798_s4, %s576_s9 }
  0x36   : > { %v377_v1 = vld [vmem:[%s339_s18] sm:$0xff]  ;;  %v364_v3 = vmul.f32 2.0, %v360_v0  ;;  %v365_v5 = vmul.f32 2.0, %v361_v2  ;;  %v378_v6 = vld [vmem:[%s339_s18 + $0x8] sm:$0xff]  ;;  %v379_v8 = vld [vmem:[%s339_s18 + $0x10] sm:$0xff]  ;;  %v372_v9 = vstv %s358_s7  ;;  %v366_v11 = vmul.f32 2.0, %v362_v7 }
  0x37   : > { %v381_v4 = vstv %s359_s8  ;;  %v363_v12 = vld [vmem:[%s323_s12 + $0x18] sm:$0xff] }
  0x38   : > { %v382_v10 = vmul.f32 %v381_v4, %v377_v1  ;;  %v380_v13 = vld [vmem:[%s339_s18 + $0x18] sm:$0xff]  ;;  %v570_v14 = vadd.f32 -1.0, %v364_v3  ;;  %v571_v15 = vadd.f32 -1.0, %v365_v5  ;;  %v383_v16 = vmul.f32 %v381_v4, %v378_v6 }
  0x39   : > { %v367_v17 = vmul.f32 2.0, %v363_v12  ;;  %v572_v18 = vadd.f32 -1.0, %v366_v11  ;;  %v384_v19 = vmul.f32 %v381_v4, %v379_v8  ;;  %v385_v23 = vmul.f32 %v381_v4, %v380_v13 }
  0x3a   : > { %v373_v20 = vmul.f32 %v570_v14, %v372_v9  ;;  %v374_v21 = vmul.f32 %v571_v15, %v372_v9 }
  0x3b   : > { %v573_v22 = vadd.f32 -1.0, %v367_v17  ;;  %v375_v24 = vmul.f32 %v572_v18, %v372_v9 }
  0x3c   : > { %v386_v25 = vadd.f32 %v382_v10, %v373_v20  ;;  %v387_v26 = vadd.f32 %v383_v16, %v374_v21 }
  0x3d   : > { %v376_v27 = vmul.f32 %v573_v22, %v372_v9  ;;  %v388_v28 = vadd.f32 %v384_v19, %v375_v24 }
  0x3e   : > { %390 = vst [vmem:[%s355_s21] sm:$0xff] %v386_v25  ;;  %391 = vst [vmem:[%s355_s21 + $0x8] sm:$0xff] %v387_v26 }
  0x3f   : > { %v389_v29 = vadd.f32 %v385_v23, %v376_v27  ;;  %392 = vst [vmem:[%s355_s21 + $0x10] sm:$0xff] %v388_v28 }
  0x41   : > { %393 = vst [vmem:[%s355_s21 + $0x18] sm:$0xff] %v389_v29 }
  0x42 PF: > { %s16_s17 = sadd.s32 1, %s684_s17   ;;  %s807_s15 = smov %s680_s16 }
  0x43   : > { %p13_p4 = scmp.ge.s32.totalorder %s16_s17, 4   ;;  %s808_s16 = smov %s810_s19 }
  0x45   :  { %15 = sbr.rel (!%p13_p4) target bundleno = 3 (0x3), region = 78 }
  0x4c   :  { %435 = vsyncpa [#allocation3], 1 }
  0x4d   :  { %437 = vsyncpa [#allocation3 + $0x1], 1 }
  0x4e   :  { %438 = vsyncpa [#allocation5], 1 }

// kernel: _forward.3
= control target key start
LH: loop header
LB: loop body
LE: loop exit
PB: predicated region body
PF: predicated region fallthrough
CT: control target
= control target key end

     0   :  { %8 = vsyncpa [#allocation4], 0  ;;  %s2782_s0 = inlined_call_operand.vmem [shape: f32[8,25344], index: 0, kind: input, shape index: {}]   ;;  %s2783_s1 = inlined_call_operand.hbm [shape: f32[25344,128], index: 1, kind: input, shape index: {}]   ;;  %s2784_s2 = inlined_call_operand.vmem [shape: f32[8,128], index: 2, kind: input, shape index: {}]   ;;  %s2785_s3 = inlined_call_operand.vmem [shape: f32[8,128], index: 3, kind: output, shape index: {}]  }
   0x1   :  { %10 = vsyncpa [#allocation4 + $0x1], 0  ;;  %s2289_s12 = smov 0   ;;  %s2291_s13 = smov 0  }
   0x2   :  { %s2293_s14 = smov 0   ;;  %s2295_s15 = smov 0  }
   0x3 LB: > { %s2308_s16 = sadd.s32 4294967295, %s2264_s15   ;;  %s2311_s17 = sadd.s32 1, %s2264_s15   ;;  %s2264_s15 = sphi %s2295_s15, %s2792_s15   ;;  %s2260_s14 = sphi %s2293_s14, %s2791_s14   ;;  %s2256_s13 = sphi %s2291_s13, %s2790_s13   ;;  %s2252_s12 = sphi %s2289_s12, %s2789_s12  }
   0x4   : > { %s46_s18 = ssub.s32 %s2264_s15, %s2311_s17  ;;  %s49_s19 = sadd.s32 1, %s2260_s14 }
   0x5   : > { %p47_p0 = scmp.eq.s32.totalorder %s46_s18, 0  ;;  %p56_p1 = scmp.ne.s32.totalorder %s2260_s14, %s2256_s13 }
   0x6   : > { %p57_p2 = scmp.eq.s32.totalorder %s2264_s15, 0  ;;  %p62_p3 = scmp.ne.s32.totalorder %s2256_s13, %s2252_s12 }
   0x7   : > { %s2321_s20 = scalar_select %p47_p0, %s2260_s14, %s49_s19  }
   0x8   : > { %p58_p4 = por %p57_p2, %p56_p1  ;;  %p63_p5 = scmp.eq.s32.totalorder %s2308_s16, 0 }
   0x9   : > { %p2165_p6 = scmp.lt.s32.totalorder %s2264_s15, 9  ;;  %s140_s22 = sand.u32 1, %s2260_s14  }
   0xa   : > { %p2325_p7 = por %p63_p5, %p62_p3  ;;  %s2157_s23 = smul.u32 2816, %s140_s22 }
   0xb   : > { %s1419_s24 = smul.u32 45056, %s2264_s15  ;;  %p2331_p8 = pnand %p2165_p6, %p58_p4 }
   0xc   : > { %s144_s29 = scalar_lea.vmem [#allocation3], %s2157_s23  ;;  %s2343_s4 = scalar_lea.sflag [#allocation4], %s140_s22 }
   0xd   : > { %s2338_s28 = scalar_lea.hbm %s2783_s1, %s1419_s24  ;;  %s151_s30 = sshll.u32 %s144_s29, 4  ;;  %s2340_s30 = int_to_ptr.vmem [resolvable:$true] %s151_s30 }
   0xe   : > { %s2200_s5 = scalar_lea.hbm %s2338_s28, 45056  ;;  %p2202_p11 = pneg %p2331_p8 }
   0xf   : > { %p2201_p10 = scmp.ne.s32.totalorder %s2338_s28, %s2200_s5  ;;  %s2205_s8 = scalar_lea.hbm %s2783_s1, 405504 }
  0x10   : > { %p2206_p0 = scmp.lt.u32.totalorder %s2338_s28, %s2783_s1  ;;  %p2207_p1 = scmp.lt.u32.totalorder %s2205_s8, %s2200_s5 }
  0x11   : > { %p2203_p12 = pnand %p2202_p11, %p2201_p10  ;;  %p2209_p3 = scmp.lt.u32.totalorder %s2200_s5, %s2338_s28 }
  0x12   : > { %p2208_p2 = por %p2207_p1, %p2206_p0 }
  0x13   : > { %p2204_p13 = pneg %p2203_p12 }
  0x14   : > { %p2210_p4 = por %p2209_p3, %p2208_p2 }
  0x16   : > { %p2211_p5 = pnand %p2210_p4, %p2204_p13 }
  0x18   : > { %2214 = shalt.err (!%p2211_p5)
}
  0x19   : > { %s2215_s11 = scalar_lea.vmem %s2340_s30, 45056  ;;  %s2266_s12 = smov [#allocation3]  }
  0x1a   : > { %p2216_p6 = scmp.ne.s32.totalorder %s2340_s30, %s2215_s11  ;;  %s2220_s18 = sshll.u32 %s2266_s12, 4  ;;  %s2221_s18 = int_to_ptr.vmem [resolvable:$false] %s2220_s18 }
  0x1b   : > { %s2222_s19 = scalar_lea.vmem %s2221_s18, 90112  ;;  %p2223_p9 = scmp.lt.s32.totalorder %s2340_s30, %s2221_s18 }
  0x1c   : > { %p2218_p10 = pnand %p2216_p6, %p2202_p11  ;;  %p2224_p0 = scmp.lt.s32.totalorder %s2222_s19, %s2215_s11 }
  0x1e   : > { %p2219_p12 = pneg %p2218_p10  ;;  %p2225_p1 = por %p2224_p0, %p2223_p9 }
  0x20   : > { %p2226_p2 = pnand %p2225_p1, %p2219_p12 }
  0x22   : > { %2229 = shalt.err (!%p2226_p2)
}
  0x23   : > { %s2267_s22 = smov 128   ;;  %s2268_s23 = smov 8  }
  0x24   : > { %2164 = dma.hbm_to_vmem [thread:$0]  (!%p2331_p8), %s2338_s28, 45056, %s2340_s30, %s2343_s4, %s2267_s22, %s2267_s22, %s2268_s23  }
  0x25   : > { %p159_p11 = scmp.lt.s32.totalorder %s2264_s15, 10  ;;  %p2788_p13 = scmp.ge.s32.totalorder %s2264_s15, 1 }
  0x27   : > { %p160_p3 = pnand %p2788_p13, %p159_p11 }
  0x28   : > { %s165_s24 = sand.u32 (!%p160_p3), 1, %s2256_s13  }
  0x29   : > { %163 = sbr.rel (%p160_p3) target bundleno = 482 (0x1e2), region = 32  ;;  %s166_s27 = scalar_lea.sflag (!%p160_p3), [#allocation4], %s165_s24 }
  0x2a   : > { %s2158_s26 = smul.u32 (!%p160_p3), 2816, %s165_s24 }
  0x2c   : > { %s2375_s29 = scalar_lea.vmem (!%p160_p3), [#allocation3], %s2158_s26 }
  0x30   : > { %2247 = dma.done.wait (%p2325_p7), %s166_s27, 45056  }
  0x31   : > { %2249 = vsyncadd (%p2325_p7), %s166_s27, 4294922240  ;;  %s192_s5 = smul.u32 22, %s2308_s16  ;;  %p1415_p8 = scmp.ne.s32.totalorder %s2308_s16, 0 }
  0x32   : > { %v203_v0 = vld [vmem:[%s2784_s2] sm:$0xff] (!%p1415_p8) }
  0x33   : > { %p193_p9 = scmp.lt.s32.totalorder %s192_s5, 197  ;;  %202 = sbr.rel (%p1415_p8) target bundleno = 58 (0x3a), region = 40  ;;  %204 = vst [vmem:[#allocation2] sm:$0xff] (!%p1415_p8), %v203_v0 }
  0x35   : > { %s2794_s5 = smov (!%p193_p9, %s192_s5), 197 }
  0x36   : > { %s1414_s25 = sshll.u32 %s2794_s5, 3 }
  0x37   : > { %s2385_s30 = scalar_lea.vmem %s2782_s0, %s1414_s25 }
  0x3a PF: > { %v244_v1 = vld [vmem:[%s2375_s29 + $0x80] sm:$0xff]  ;;  %v245_v2 = vld [vmem:[%s2375_s29 + $0x88] sm:$0xff]  ;;  %v246_v12 = vld [vmem:[%s2375_s29 + $0x90] sm:$0xff]  ;;  %p1416_p7 = scmp.ne.s32.totalorder %s2308_s16, 8 }
  0x3b   : > { %v276_v3 = vld [vmem:[%s2375_s29 + $0x180] sm:$0xff]  ;;  %v1805_v4 = vpack.c.bf16 %v245_v2, %v244_v1  ;;  %v277_v5 = vld [vmem:[%s2375_s29 + $0x188] sm:$0xff]  ;;  %v247_v14 = vld [vmem:[%s2375_s29 + $0x98] sm:$0xff] }
  0x3c   : > { %v228_v6 = vld [vmem:[%s2375_s29] sm:$0xff]  ;;  %v229_v7 = vld [vmem:[%s2375_s29 + $0x8] sm:$0xff]  ;;  %v1837_v8 = vpack.c.bf16 %v277_v5, %v276_v3  ;;  %v278_v15 = vld [vmem:[%s2375_s29 + $0x190] sm:$0xff]  ;;  %v1809_v17 = vpack.c.bf16 %v247_v14, %v246_v12 }
  0x3d   : > { %v1807_v9 = vpack.c.bf16 %v229_v7, %v228_v6  ;;  %v260_v10 = vld [vmem:[%s2375_s29 + $0x100] sm:$0xff]  ;;  %v261_v11 = vld [vmem:[%s2375_s29 + $0x108] sm:$0xff]  ;;  %1806 = vmatprep.subr.bf16.mxu0 %v1805_v4  ;;  %v279_v16 = vld [vmem:[%s2375_s29 + $0x198] sm:$0xff] }
  0x3e   : > { %v1839_v13 = vpack.c.bf16 %v261_v11, %v260_v10  ;;  %1838 = vmatprep.subr.bf16.mxu1 %v1837_v8  ;;  %v1841_v18 = vpack.c.bf16 %v279_v16, %v278_v15  ;;  %v230_v19 = vld [vmem:[%s2375_s29 + $0x10] sm:$0xff]  ;;  %v231_v20 = vld [vmem:[%s2375_s29 + $0x18] sm:$0xff]  ;;  %v248_v24 = vld [vmem:[%s2375_s29 + $0xa0] sm:$0xff] }
  0x3f   : > { %1808 = vmatpush3.bf16.msra.mxu0 %v1807_v9  ;;  %v262_v21 = vld [vmem:[%s2375_s29 + $0x110] sm:$0xff]  ;;  %v1811_v22 = vpack.c.bf16 %v231_v20, %v230_v19  ;;  %v263_v23 = vld [vmem:[%s2375_s29 + $0x118] sm:$0xff]  ;;  %v249_v25 = vld [vmem:[%s2375_s29 + $0xa8] sm:$0xff] }
  0x40   : > { %1840 = vmatpush3.bf16.msra.mxu1 %v1839_v13  ;;  %1810 = vmatprep.subr.bf16.mxu0 %v1809_v17  ;;  %v1843_v26 = vpack.c.bf16 %v263_v23, %v262_v21  ;;  %v1813_v27 = vpack.c.bf16 %v249_v25, %v248_v24  ;;  %v280_v28 = vld [vmem:[%s2375_s29 + $0x1a0] sm:$0xff]  ;;  %v281_v29 = vld [vmem:[%s2375_s29 + $0x1a8] sm:$0xff]  ;;  %v250_v36 = vld [vmem:[%s2375_s29 + $0xb0] sm:$0xff] }
  0x41   : > { %1842 = vmatprep.subr.bf16.mxu1 %v1841_v18  ;;  %v232_v30 = vld [vmem:[%s2375_s29 + $0x20] sm:$0xff]  ;;  %v1845_v31 = vpack.c.bf16 %v281_v29, %v280_v28  ;;  %v233_v32 = vld [vmem:[%s2375_s29 + $0x28] sm:$0xff]  ;;  %v251_v37 = vld [vmem:[%s2375_s29 + $0xb8] sm:$0xff] }
  0x42   : > { %v264_v33 = vld [vmem:[%s2375_s29 + $0x120] sm:$0xff]  ;;  %v265_v34 = vld [vmem:[%s2375_s29 + $0x128] sm:$0xff]  ;;  %v1815_v35 = vpack.c.bf16 %v233_v32, %v232_v30  ;;  %v282_v38 = vld [vmem:[%s2375_s29 + $0x1b0] sm:$0xff]  ;;  %v1817_v40 = vpack.c.bf16 %v251_v37, %v250_v36 }
  0x43   : > { %1812 = vmatpush3.bf16.msra.mxu0 %v1811_v22  ;;  %v1847_v39 = vpack.c.bf16 %v265_v34, %v264_v33  ;;  %v283_v41 = vld [vmem:[%s2375_s29 + $0x1b8] sm:$0xff]  ;;  %v234_v42 = vld [vmem:[%s2375_s29 + $0x30] sm:$0xff]  ;;  %v252_v47 = vld [vmem:[%s2375_s29 + $0xc0] sm:$0xff] }
  0x44   : > { %1844 = vmatpush3.bf16.msra.mxu1 %v1843_v26  ;;  %1814 = vmatprep.subr.bf16.mxu0 %v1813_v27  ;;  %v235_v43 = vld [vmem:[%s2375_s29 + $0x38] sm:$0xff]  ;;  %v1849_v44 = vpack.c.bf16 %v283_v41, %v282_v38  ;;  %v266_v45 = vld [vmem:[%s2375_s29 + $0x130] sm:$0xff]  ;;  %v253_v48 = vld [vmem:[%s2375_s29 + $0xc8] sm:$0xff] }
  0x45   : > { %1846 = vmatprep.subr.bf16.mxu1 %v1845_v31  ;;  %v267_v46 = vld [vmem:[%s2375_s29 + $0x138] sm:$0xff]  ;;  %v284_v49 = vld [vmem:[%s2375_s29 + $0x1c0] sm:$0xff]  ;;  %v285_v50 = vld [vmem:[%s2375_s29 + $0x1c8] sm:$0xff]  ;;  %v1819_v51 = vpack.c.bf16 %v235_v43, %v234_v42  ;;  %v1821_v53 = vpack.c.bf16 %v253_v48, %v252_v47 }
  0x46   : > { %v1851_v52 = vpack.c.bf16 %v267_v46, %v266_v45  ;;  %v236_v54 = vld [vmem:[%s2375_s29 + $0x40] sm:$0xff]  ;;  %v237_v55 = vld [vmem:[%s2375_s29 + $0x48] sm:$0xff]  ;;  %v1853_v57 = vpack.c.bf16 %v285_v50, %v284_v49  ;;  %v254_v59 = vld [vmem:[%s2375_s29 + $0xd0] sm:$0xff] }
  0x47   : > { %1816 = vmatpush3.bf16.msra.mxu0 %v1815_v35  ;;  %v268_v56 = vld [vmem:[%s2375_s29 + $0x140] sm:$0xff]  ;;  %v269_v58 = vld [vmem:[%s2375_s29 + $0x148] sm:$0xff]  ;;  %v255_v60 = vld [vmem:[%s2375_s29 + $0xd8] sm:$0xff]  ;;  %v1823_v63 = vpack.c.bf16 %v237_v55, %v236_v54 }
  0x48   : > { %1848 = vmatpush3.bf16.msra.mxu1 %v1847_v39  ;;  %1818 = vmatprep.subr.bf16.mxu0 %v1817_v40  ;;  %v286_v61 = vld [vmem:[%s2375_s29 + $0x1d0] sm:$0xff]  ;;  %v287_v62 = vld [vmem:[%s2375_s29 + $0x1d8] sm:$0xff]  ;;  %v1855_v0 = vpack.c.bf16 %v269_v58, %v268_v56  ;;  %v1825_v1 = vpack.c.bf16 %v255_v60, %v254_v59  ;;  %v256_v7 = vld [vmem:[%s2375_s29 + $0xe0] sm:$0xff] }
  0x49   : > { %1850 = vmatprep.subr.bf16.mxu1 %v1849_v44  ;;  %v238_v2 = vld [vmem:[%s2375_s29 + $0x50] sm:$0xff]  ;;  %v239_v3 = vld [vmem:[%s2375_s29 + $0x58] sm:$0xff]  ;;  %v1857_v5 = vpack.c.bf16 %v287_v62, %v286_v61  ;;  %v257_v8 = vld [vmem:[%s2375_s29 + $0xe8] sm:$0xff] }
  0x4a   : > { %v270_v4 = vld [vmem:[%s2375_s29 + $0x150] sm:$0xff]  ;;  %v271_v6 = vld [vmem:[%s2375_s29 + $0x158] sm:$0xff]  ;;  %v288_v9 = vld [vmem:[%s2375_s29 + $0x1e0] sm:$0xff]  ;;  %v1827_v11 = vpack.c.bf16 %v239_v3, %v238_v2  ;;  %v1829_v15 = vpack.c.bf16 %v257_v8, %v256_v7 }
  0x4b   : > { %1820 = vmatpush3.bf16.msra.mxu0 %v1819_v51  ;;  %v289_v10 = vld [vmem:[%s2375_s29 + $0x1e8] sm:$0xff]  ;;  %v240_v12 = vld [vmem:[%s2375_s29 + $0x60] sm:$0xff]  ;;  %v1859_v14 = vpack.c.bf16 %v271_v6, %v270_v4  ;;  %v209_v18 = vld [vmem:[%s2385_s30 + $0x18] sm:$0xff] }
  0x4c   : > { %1852 = vmatpush3.bf16.msra.mxu1 %v1851_v52  ;;  %1822 = vmatprep.subr.bf16.mxu0 %v1821_v53  ;;  %v241_v13 = vld [vmem:[%s2375_s29 + $0x68] sm:$0xff]  ;;  %v272_v16 = vld [vmem:[%s2375_s29 + $0x160] sm:$0xff]  ;;  %v1861_v19 = vpack.c.bf16 %v289_v10, %v288_v9  ;;  %v258_v21 = vld [vmem:[%s2375_s29 + $0xf0] sm:$0xff] }
  0x4d   : > { %1854 = vmatprep.subr.bf16.mxu1 %v1853_v57  ;;  %v207_v17 = vld [vmem:[%s2385_s30 + $0x8] sm:$0xff]  ;;  %v273_v20 = vld [vmem:[%s2375_s29 + $0x168] sm:$0xff]  ;;  %v259_v22 = vld [vmem:[%s2375_s29 + $0xf8] sm:$0xff]  ;;  %714 = vmatprep.mubr.f32.mxu1 %v209_v18  ;;  %v1831_v25 = vpack.c.bf16 %v241_v13, %v240_v12 }
  0x4e   : > { %644 = vmatprep.mubr.f32.mxu0 %v207_v17  ;;  %v290_v23 = vld [vmem:[%s2375_s29 + $0x1f0] sm:$0xff]  ;;  %v291_v24 = vld [vmem:[%s2375_s29 + $0x1f8] sm:$0xff]  ;;  %v1863_v26 = vpack.c.bf16 %v273_v20, %v272_v16  ;;  %v1833_v27 = vpack.c.bf16 %v259_v22, %v258_v21  ;;  %v308_v33 = vld [vmem:[%s2375_s29 + $0x280] sm:$0xff] }
  0x4f   : > { %1824 = vmatpush3.bf16.msra.mxu0 %v1823_v63  ;;  %v242_v28 = vld [vmem:[%s2375_s29 + $0x70] sm:$0xff]  ;;  %v243_v29 = vld [vmem:[%s2375_s29 + $0x78] sm:$0xff]  ;;  %v1865_v31 = vpack.c.bf16 %v291_v24, %v290_v23  ;;  %v309_v34 = vld [vmem:[%s2375_s29 + $0x288] sm:$0xff] }
  0x50   : > { %1856 = vmatpush3.bf16.msra.mxu1 %v1855_v0  ;;  %1826 = vmatprep.subr.bf16.mxu0 %v1825_v1  ;;  %v274_v30 = vld [vmem:[%s2375_s29 + $0x170] sm:$0xff]  ;;  %v275_v32 = vld [vmem:[%s2375_s29 + $0x178] sm:$0xff]  ;;  %v340_v35 = vld [vmem:[%s2375_s29 + $0x380] sm:$0xff]  ;;  %v1835_v37 = vpack.c.bf16 %v243_v29, %v242_v28  ;;  %v1869_v39 = vpack.c.bf16 %v309_v34, %v308_v33 }
  0x51   : > { %1858 = vmatprep.subr.bf16.mxu1 %v1857_v5  ;;  %v341_v36 = vld [vmem:[%s2375_s29 + $0x388] sm:$0xff]  ;;  %v1867_v38 = vpack.c.bf16 %v275_v32, %v274_v30  ;;  %v292_v40 = vld [vmem:[%s2375_s29 + $0x200] sm:$0xff]  ;;  %v310_v45 = vld [vmem:[%s2375_s29 + $0x290] sm:$0xff] }
  0x52   : > { %v293_v41 = vld [vmem:[%s2375_s29 + $0x208] sm:$0xff]  ;;  %v324_v42 = vld [vmem:[%s2375_s29 + $0x300] sm:$0xff]  ;;  %v1901_v43 = vpack.c.bf16 %v341_v36, %v340_v35  ;;  %v311_v46 = vld [vmem:[%s2375_s29 + $0x298] sm:$0xff] }
  0x53   : > { %1828 = vmatpush3.bf16.msra.mxu0 %v1827_v11  ;;  %v325_v44 = vld [vmem:[%s2375_s29 + $0x308] sm:$0xff]  ;;  %v342_v47 = vld [vmem:[%s2375_s29 + $0x390] sm:$0xff]  ;;  %v343_v48 = vld [vmem:[%s2375_s29 + $0x398] sm:$0xff]  ;;  %v1871_v51 = vpack.c.bf16 %v293_v41, %v292_v40  ;;  %v1873_v53 = vpack.c.bf16 %v311_v46, %v310_v45 }
  0x54   : > { %1860 = vmatpush3.bf16.msra.mxu1 %v1859_v14  ;;  %1830 = vmatprep.subr.bf16.mxu0 %v1829_v15  ;;  %v206_v49 = vld [vmem:[%s2385_s30] sm:$0xff]  ;;  %v208_v50 = vld [vmem:[%s2385_s30 + $0x10] sm:$0xff]  ;;  %v1903_v52 = vpack.c.bf16 %v325_v44, %v324_v42  ;;  %v294_v54 = vld [vmem:[%s2375_s29 + $0x210] sm:$0xff]  ;;  %v1905_v57 = vpack.c.bf16 %v343_v48, %v342_v47 }
  0x55   : > { %1862 = vmatprep.subr.bf16.mxu1 %v1861_v19  ;;  %v295_v55 = vld [vmem:[%s2375_s29 + $0x218] sm:$0xff]  ;;  %v326_v56 = vld [vmem:[%s2375_s29 + $0x310] sm:$0xff]  ;;  %v312_v59 = vld [vmem:[%s2375_s29 + $0x2a0] sm:$0xff] }
  0x56   : > { %v327_v58 = vld [vmem:[%s2375_s29 + $0x318] sm:$0xff]  ;;  %v313_v60 = vld [vmem:[%s2375_s29 + $0x2a8] sm:$0xff]  ;;  %v344_v61 = vld [vmem:[%s2375_s29 + $0x3a0] sm:$0xff]  ;;  %v1875_v63 = vpack.c.bf16 %v295_v55, %v294_v54 }
  0x57   : > { %1832 = vmatpush3.bf16.msra.mxu0 %v1831_v25  ;;  %v345_v62 = vld [vmem:[%s2375_s29 + $0x3a8] sm:$0xff]  ;;  %v1907_v0 = vpack.c.bf16 %v327_v58, %v326_v56  ;;  %v1877_v1 = vpack.c.bf16 %v313_v60, %v312_v59  ;;  %v296_v2 = vld [vmem:[%s2375_s29 + $0x220] sm:$0xff]  ;;  %v314_v7 = vld [vmem:[%s2375_s29 + $0x2b0] sm:$0xff] }
  0x58   : > { %1864 = vmatpush3.bf16.msra.mxu1 %v1863_v26  ;;  %1834 = vmatprep.subr.bf16.mxu0 %v1833_v27  ;;  %v297_v3 = vld [vmem:[%s2375_s29 + $0x228] sm:$0xff]  ;;  %v328_v4 = vld [vmem:[%s2375_s29 + $0x320] sm:$0xff]  ;;  %v1909_v5 = vpack.c.bf16 %v345_v62, %v344_v61  ;;  %v315_v8 = vld [vmem:[%s2375_s29 + $0x2b8] sm:$0xff] }
  0x59   : > { %1866 = vmatprep.subr.bf16.mxu1 %v1865_v31  ;;  %v329_v6 = vld [vmem:[%s2375_s29 + $0x328] sm:$0xff]  ;;  %v346_v9 = vld [vmem:[%s2375_s29 + $0x3b0] sm:$0xff]  ;;  %v347_v10 = vld [vmem:[%s2375_s29 + $0x3b8] sm:$0xff]  ;;  %v1879_v11 = vpack.c.bf16 %v297_v3, %v296_v2  ;;  %v1881_v13 = vpack.c.bf16 %v315_v8, %v314_v7 }
  0x5a   : > { %v1911_v12 = vpack.c.bf16 %v329_v6, %v328_v4  ;;  %v298_v14 = vld [vmem:[%s2375_s29 + $0x230] sm:$0xff]  ;;  %v299_v15 = vld [vmem:[%s2375_s29 + $0x238] sm:$0xff]  ;;  %v1913_v17 = vpack.c.bf16 %v347_v10, %v346_v9  ;;  %v316_v19 = vld [vmem:[%s2375_s29 + $0x2c0] sm:$0xff] }
  0x5b   : > { %1836 = vmatpush3.bf16.msra.mxu0 %v1835_v37  ;;  %v330_v16 = vld [vmem:[%s2375_s29 + $0x330] sm:$0xff]  ;;  %v331_v18 = vld [vmem:[%s2375_s29 + $0x338] sm:$0xff]  ;;  %v317_v20 = vld [vmem:[%s2375_s29 + $0x2c8] sm:$0xff]  ;;  %v1883_v24 = vpack.c.bf16 %v299_v15, %v298_v14 }
  0x5c   : > { %1868 = vmatpush3.bf16.msra.mxu1 %v1867_v38  ;;  %1870 = vmatprep.subr.bf16.mxu0 %v1869_v39  ;;  %v348_v21 = vld [vmem:[%s2375_s29 + $0x3c0] sm:$0xff]  ;;  %v349_v22 = vld [vmem:[%s2375_s29 + $0x3c8] sm:$0xff]  ;;  %v1915_v26 = vpack.c.bf16 %v331_v18, %v330_v16  ;;  %v1885_v27 = vpack.c.bf16 %v317_v20, %v316_v19  ;;  %v213_v30 = vld [vmem:[%s2385_s30 + $0x38] sm:$0xff] }
  0x5d   : > { %1902 = vmatprep.subr.bf16.mxu1 %v1901_v43  ;;  %v211_v23 = vld [vmem:[%s2385_s30 + $0x28] sm:$0xff]  ;;  %v301_v28 = vld [vmem:[%s2375_s29 + $0x248] sm:$0xff]  ;;  %v1917_v31 = vpack.c.bf16 %v349_v22, %v348_v21  ;;  %v318_v33 = vld [vmem:[%s2375_s29 + $0x2d0] sm:$0xff] }
  0x5e   : > { %645 = vmatmul.mubr.f32.vlgmr.msra.gmra.mrb[0].mxu0 %v206_v49  ;;  %v300_v25 = vld [vmem:[%s2375_s29 + $0x240] sm:$0xff]  ;;  %v333_v32 = vld [vmem:[%s2375_s29 + $0x348] sm:$0xff]  ;;  %v319_v34 = vld [vmem:[%s2375_s29 + $0x2d8] sm:$0xff] }
  0x5f   : > { %715 = vmatmul.mubr.f32.vlgmr.msra.gmra.mrb[0].mxu1 %v208_v50  ;;  %1872 = vmatpush3.bf16.msra.mxu0 %v1871_v51  ;;  %v332_v29 = vld [vmem:[%s2375_s29 + $0x340] sm:$0xff]  ;;  %v350_v35 = vld [vmem:[%s2375_s29 + $0x3d0] sm:$0xff]  ;;  %v351_v36 = vld [vmem:[%s2375_s29 + $0x3d8] sm:$0xff]  ;;  %v1887_v37 = vpack.c.bf16 %v301_v28, %v300_v25  ;;  %v1889_v39 = vpack.c.bf16 %v319_v34, %v318_v33 }
  0x60   : > { %1904 = vmatpush3.bf16.msra.mxu1 %v1903_v52  ;;  %1874 = vmatprep.subr.bf16.mxu0 %v1873_v53  ;;  %v1919_v38 = vpack.c.bf16 %v333_v32, %v332_v29  ;;  %v302_v40 = vld [vmem:[%s2375_s29 + $0x250] sm:$0xff]  ;;  %v303_v41 = vld [vmem:[%s2375_s29 + $0x258] sm:$0xff]  ;;  %v1921_v43 = vpack.c.bf16 %v351_v36, %v350_v35  ;;  %v320_v45 = vld [vmem:[%s2375_s29 + $0x2e0] sm:$0xff] }
  0x61   : > { %1906 = vmatprep.subr.bf16.mxu1 %v1905_v57  ;;  %784 = vmatprep.mubr.f32.mxu0 %v211_v23  ;;  %v334_v42 = vld [vmem:[%s2375_s29 + $0x350] sm:$0xff]  ;;  %v335_v44 = vld [vmem:[%s2375_s29 + $0x358] sm:$0xff]  ;;  %v321_v46 = vld [vmem:[%s2375_s29 + $0x2e8] sm:$0xff]  ;;  %v1891_v49 = vpack.c.bf16 %v303_v41, %v302_v40 }
  0x62   : > { %854 = vmatprep.mubr.f32.mxu1 %v213_v30  ;;  %v352_v47 = vld [vmem:[%s2375_s29 + $0x3e0] sm:$0xff]  ;;  %v353_v48 = vld [vmem:[%s2375_s29 + $0x3e8] sm:$0xff]  ;;  %v1923_v50 = vpack.c.bf16 %v335_v44, %v334_v42  ;;  %v1893_v51 = vpack.c.bf16 %v321_v46, %v320_v45  ;;  %v322_v57 = vld [vmem:[%s2375_s29 + $0x2f0] sm:$0xff] }
  0x63   : > { %1876 = vmatpush3.bf16.msra.mxu0 %v1875_v63  ;;  %v304_v52 = vld [vmem:[%s2375_s29 + $0x260] sm:$0xff]  ;;  %v305_v53 = vld [vmem:[%s2375_s29 + $0x268] sm:$0xff]  ;;  %v1925_v55 = vpack.c.bf16 %v353_v48, %v352_v47  ;;  %v323_v58 = vld [vmem:[%s2375_s29 + $0x2f8] sm:$0xff] }
  0x64   : > { %1908 = vmatpush3.bf16.msra.mxu1 %v1907_v0  ;;  %1878 = vmatprep.subr.bf16.mxu0 %v1877_v1  ;;  %v336_v54 = vld [vmem:[%s2375_s29 + $0x360] sm:$0xff]  ;;  %v337_v56 = vld [vmem:[%s2375_s29 + $0x368] sm:$0xff]  ;;  %v354_v59 = vld [vmem:[%s2375_s29 + $0x3f0] sm:$0xff]  ;;  %v1895_v61 = vpack.c.bf16 %v305_v53, %v304_v52  ;;  %v1897_v63 = vpack.c.bf16 %v323_v58, %v322_v57 }
  0x65   : > { %1910 = vmatprep.subr.bf16.mxu1 %v1909_v5  ;;  %v355_v60 = vld [vmem:[%s2375_s29 + $0x3f8] sm:$0xff]  ;;  %v1927_v62 = vpack.c.bf16 %v337_v56, %v336_v54  ;;  %v306_v0 = vld [vmem:[%s2375_s29 + $0x270] sm:$0xff]  ;;  %v372_v5 = vld [vmem:[%s2375_s29 + $0x480] sm:$0xff] }
  0x66   : > { %v307_v1 = vld [vmem:[%s2375_s29 + $0x278] sm:$0xff]  ;;  %v338_v2 = vld [vmem:[%s2375_s29 + $0x370] sm:$0xff]  ;;  %v1929_v3 = vpack.c.bf16 %v355_v60, %v354_v59  ;;  %v373_v6 = vld [vmem:[%s2375_s29 + $0x488] sm:$0xff] }
  0x67   : > { %1880 = vmatpush3.bf16.msra.mxu0 %v1879_v11  ;;  %v339_v4 = vld [vmem:[%s2375_s29 + $0x378] sm:$0xff]  ;;  %v404_v7 = vld [vmem:[%s2375_s29 + $0x580] sm:$0xff]  ;;  %v405_v8 = vld [vmem:[%s2375_s29 + $0x588] sm:$0xff]  ;;  %v1899_v9 = vpack.c.bf16 %v307_v1, %v306_v0  ;;  %v1933_v11 = vpack.c.bf16 %v373_v6, %v372_v5 }
  0x68   : > { %1912 = vmatpush3.bf16.msra.mxu1 %v1911_v12  ;;  %1882 = vmatprep.subr.bf16.mxu0 %v1881_v13  ;;  %v1931_v10 = vpack.c.bf16 %v339_v4, %v338_v2  ;;  %v356_v12 = vld [vmem:[%s2375_s29 + $0x400] sm:$0xff]  ;;  %v357_v13 = vld [vmem:[%s2375_s29 + $0x408] sm:$0xff]  ;;  %v1965_v15 = vpack.c.bf16 %v405_v8, %v404_v7  ;;  %v375_v18 = vld [vmem:[%s2375_s29 + $0x498] sm:$0xff] }
  0x69   : > { %1914 = vmatprep.subr.bf16.mxu1 %v1913_v17  ;;  %v388_v14 = vld [vmem:[%s2375_s29 + $0x500] sm:$0xff]  ;;  %v389_v16 = vld [vmem:[%s2375_s29 + $0x508] sm:$0xff]  ;;  %v374_v17 = vld [vmem:[%s2375_s29 + $0x490] sm:$0xff]  ;;  %v1935_v22 = vpack.c.bf16 %v357_v13, %v356_v12 }
  0x6a   : > { %v406_v19 = vld [vmem:[%s2375_s29 + $0x590] sm:$0xff]  ;;  %v407_v20 = vld [vmem:[%s2375_s29 + $0x598] sm:$0xff]  ;;  %v212_v23 = vld [vmem:[%s2385_s30 + $0x30] sm:$0xff]  ;;  %v1937_v25 = vpack.c.bf16 %v375_v18, %v374_v17 }
  0x6b   : > { %1884 = vmatpush3.bf16.msra.mxu0 %v1883_v24  ;;  %v210_v21 = vld [vmem:[%s2385_s30 + $0x20] sm:$0xff]  ;;  %v1967_v24 = vpack.c.bf16 %v389_v16, %v388_v14  ;;  %v390_v28 = vld [vmem:[%s2375_s29 + $0x510] sm:$0xff]  ;;  %v1969_v29 = vpack.c.bf16 %v407_v20, %v406_v19  ;;  %v377_v32 = vld [vmem:[%s2375_s29 + $0x4a8] sm:$0xff] }
  0x6c   : > { %1916 = vmatpush3.bf16.msra.mxu1 %v1915_v26  ;;  %1886 = vmatprep.subr.bf16.mxu0 %v1885_v27  ;;  %v358_v26 = vld [vmem:[%s2375_s29 + $0x410] sm:$0xff]  ;;  %v359_v27 = vld [vmem:[%s2375_s29 + $0x418] sm:$0xff]  ;;  %v408_v33 = vld [vmem:[%s2375_s29 + $0x5a0] sm:$0xff] }
  0x6d   : > { %1918 = vmatprep.subr.bf16.mxu1 %v1917_v31  ;;  %v391_v30 = vld [vmem:[%s2375_s29 + $0x518] sm:$0xff]  ;;  %v376_v31 = vld [vmem:[%s2375_s29 + $0x4a0] sm:$0xff]  ;;  %v409_v34 = vld [vmem:[%s2375_s29 + $0x5a8] sm:$0xff]  ;;  %v1939_v36 = vpack.c.bf16 %v359_v27, %v358_v26 }
  0x6e   : > { %v215_v35 = vld [vmem:[%s2385_s30 + $0x48] sm:$0xff]  ;;  %v361_v41 = vld [vmem:[%s2375_s29 + $0x428] sm:$0xff]  ;;  %v378_v45 = vld [vmem:[%s2375_s29 + $0x4b0] sm:$0xff] }
  0x6f   : > { %1888 = vmatpush3.bf16.msra.mxu0 %v1887_v37  ;;  %v217_v37 = vld [vmem:[%s2385_s30 + $0x58] sm:$0xff]  ;;  %v360_v40 = vld [vmem:[%s2375_s29 + $0x420] sm:$0xff]  ;;  %v393_v44 = vld [vmem:[%s2375_s29 + $0x528] sm:$0xff] }
  0x70   : > { %1920 = vmatpush3.bf16.msra.mxu1 %v1919_v38  ;;  %1890 = vmatprep.subr.bf16.mxu0 %v1889_v39  ;;  %v1971_v38 = vpack.c.bf16 %v391_v30, %v390_v28  ;;  %v1941_v39 = vpack.c.bf16 %v377_v32, %v376_v31  ;;  %v392_v42 = vld [vmem:[%s2375_s29 + $0x520] sm:$0xff]  ;;  %v379_v46 = vld [vmem:[%s2375_s29 + $0x4b8] sm:$0xff]  ;;  %v410_v47 = vld [vmem:[%s2375_s29 + $0x5b0] sm:$0xff] }
  0x71   : > { %1922 = vmatprep.subr.bf16.mxu1 %v1921_v43  ;;  %v1973_v43 = vpack.c.bf16 %v409_v34, %v408_v33  ;;  %v411_v48 = vld [vmem:[%s2375_s29 + $0x5b8] sm:$0xff]  ;;  %v362_v52 = vld [vmem:[%s2375_s29 + $0x430] sm:$0xff]  ;;  %v380_v57 = vld [vmem:[%s2375_s29 + $0x4c0] sm:$0xff] }
  0x72   : > { %v363_v53 = vld [vmem:[%s2375_s29 + $0x438] sm:$0xff]  ;;  %v394_v54 = vld [vmem:[%s2375_s29 + $0x530] sm:$0xff]  ;;  %v381_v58 = vld [vmem:[%s2375_s29 + $0x4c8] sm:$0xff] }
  0x73   : > { %1892 = vmatpush3.bf16.msra.mxu0 %v1891_v49  ;;  %v1943_v49 = vpack.c.bf16 %v361_v41, %v360_v40  ;;  %v395_v56 = vld [vmem:[%s2375_s29 + $0x538] sm:$0xff]  ;;  %v412_v59 = vld [vmem:[%s2375_s29 + $0x5c0] sm:$0xff]  ;;  %v413_v60 = vld [vmem:[%s2375_s29 + $0x5c8] sm:$0xff] }
  0x74   : > { %1924 = vmatpush3.bf16.msra.mxu1 %v1923_v50  ;;  %1894 = vmatprep.subr.bf16.mxu0 %v1893_v51  ;;  %v1975_v50 = vpack.c.bf16 %v393_v44, %v392_v42  ;;  %v1945_v51 = vpack.c.bf16 %v379_v46, %v378_v45  ;;  %v364_v0 = vld [vmem:[%s2375_s29 + $0x440] sm:$0xff]  ;;  %v365_v1 = vld [vmem:[%s2375_s29 + $0x448] sm:$0xff]  ;;  %v382_v5 = vld [vmem:[%s2375_s29 + $0x4d0] sm:$0xff] }
  0x75   : > { %1926 = vmatprep.subr.bf16.mxu1 %v1925_v55  ;;  %v1977_v55 = vpack.c.bf16 %v411_v48, %v410_v47  ;;  %v396_v2 = vld [vmem:[%s2375_s29 + $0x540] sm:$0xff]  ;;  %v397_v4 = vld [vmem:[%s2375_s29 + $0x548] sm:$0xff]  ;;  %v383_v6 = vld [vmem:[%s2375_s29 + $0x4d8] sm:$0xff] }
  0x76   : > { %v414_v7 = vld [vmem:[%s2375_s29 + $0x5d0] sm:$0xff]  ;;  %v415_v8 = vld [vmem:[%s2375_s29 + $0x5d8] sm:$0xff]  ;;  %v384_v17 = vld [vmem:[%s2375_s29 + $0x4e0] sm:$0xff] }
  0x77   : > { %1896 = vmatpush3.bf16.msra.mxu0 %v1895_v61  ;;  %v1947_v61 = vpack.c.bf16 %v363_v53, %v362_v52  ;;  %v366_v12 = vld [vmem:[%s2375_s29 + $0x450] sm:$0xff]  ;;  %v367_v13 = vld [vmem:[%s2375_s29 + $0x458] sm:$0xff]  ;;  %v385_v18 = vld [vmem:[%s2375_s29 + $0x4e8] sm:$0xff] }
  0x78   : > { %1928 = vmatpush3.bf16.msra.mxu1 %v1927_v62  ;;  %1898 = vmatprep.subr.bf16.mxu0 %v1897_v63  ;;  %v1979_v62 = vpack.c.bf16 %v395_v56, %v394_v54  ;;  %v1949_v63 = vpack.c.bf16 %v381_v58, %v380_v57  ;;  %v398_v14 = vld [vmem:[%s2375_s29 + $0x550] sm:$0xff]  ;;  %v399_v16 = vld [vmem:[%s2375_s29 + $0x558] sm:$0xff]  ;;  %v416_v19 = vld [vmem:[%s2375_s29 + $0x5e0] sm:$0xff] }
  0x79   : > { %1930 = vmatprep.subr.bf16.mxu1 %v1929_v3  ;;  %v1981_v3 = vpack.c.bf16 %v413_v60, %v412_v59  ;;  %v417_v20 = vld [vmem:[%s2375_s29 + $0x5e8] sm:$0xff]  ;;  %v400_v26 = vld [vmem:[%s2375_s29 + $0x560] sm:$0xff]  ;;  %v387_v30 = vld [vmem:[%s2375_s29 + $0x4f8] sm:$0xff] }
  0x7a   : > { %v1989_v27 = vpack.c.bf16 %v417_v20, %v416_v19  ;;  %v401_v28 = vld [vmem:[%s2375_s29 + $0x568] sm:$0xff]  ;;  %v418_v31 = vld [vmem:[%s2375_s29 + $0x5f0] sm:$0xff]  ;;  %v419_v32 = vld [vmem:[%s2375_s29 + $0x5f8] sm:$0xff] }
  0x7b   : > { %1900 = vmatpush3.bf16.msra.mxu0 %v1899_v9  ;;  %v1951_v9 = vpack.c.bf16 %v365_v1, %v364_v0  ;;  %v1991_v34 = vpack.c.bf16 %v401_v28, %v400_v26  ;;  %v403_v40 = vld [vmem:[%s2375_s29 + $0x578] sm:$0xff]  ;;  %v436_v41 = vld [vmem:[%s2375_s29 + $0x680] sm:$0xff]  ;;  %v437_v42 = vld [vmem:[%s2375_s29 + $0x688] sm:$0xff] }
  0x7c   : > { %1932 = vmatpush3.bf16.msra.mxu1 %v1931_v10  ;;  %1934 = vmatprep.subr.bf16.mxu0 %v1933_v11  ;;  %v1983_v10 = vpack.c.bf16 %v397_v4, %v396_v2  ;;  %v1953_v11 = vpack.c.bf16 %v383_v6, %v382_v5  ;;  %v469_v44 = vld [vmem:[%s2375_s29 + $0x788] sm:$0xff]  ;;  %v1997_v47 = vpack.c.bf16 %v437_v42, %v436_v41  ;;  %v420_v48 = vld [vmem:[%s2375_s29 + $0x600] sm:$0xff]  ;;  %v438_v53 = vld [vmem:[%s2375_s29 + $0x690] sm:$0xff] }
  0x7d   : > { %1966 = vmatprep.subr.bf16.mxu1 %v1965_v15  ;;  %v1985_v15 = vpack.c.bf16 %v415_v8, %v414_v7  ;;  %v453_v52 = vld [vmem:[%s2375_s29 + $0x708] sm:$0xff]  ;;  %v439_v54 = vld [vmem:[%s2375_s29 + $0x698] sm:$0xff]  ;;  %v454_v0 = vld [vmem:[%s2375_s29 + $0x710] sm:$0xff] }
  0x7e   : > { %785 = vmatmul.mubr.f32.vlgmr.msra.gmra.mrb[2].mxu0 %v210_v21  ;;  %v1955_v21 = vpack.c.bf16 %v367_v13, %v366_v12  ;;  %v471_v56 = vld [vmem:[%s2375_s29 + $0x798] sm:$0xff]  ;;  %v216_v59 = vld [vmem:[%s2385_s30 + $0x50] sm:$0xff]  ;;  %v472_v5 = vld [vmem:[%s2375_s29 + $0x7a0] sm:$0xff] }
  0x7f   : > { %1936 = vmatpush3.bf16.msra.mxu0 %v1935_v22  ;;  %855 = vmatmul.mubr.f32.vlgmr.msra.gmra.mrb[2].mxu1 %v212_v23  ;;  %v1987_v22 = vpack.c.bf16 %v399_v16, %v398_v14  ;;  %v1957_v23 = vpack.c.bf16 %v385_v18, %v384_v17  ;;  %v214_v57 = vld [vmem:[%s2385_s30 + $0x40] sm:$0xff]  ;;  %v441_v4 = vld [vmem:[%s2375_s29 + $0x6a8] sm:$0xff]  ;;  %v219_v7 = vld [vmem:[%s2385_s30 + $0x68] sm:$0xff] }
  0x80   : > { %1968 = vmatpush3.bf16.msra.mxu1 %v1967_v24  ;;  %1938 = vmatprep.subr.bf16.mxu0 %v1937_v25  ;;  %v368_v24 = vld [vmem:[%s2375_s29 + $0x460] sm:$0xff]  ;;  %v369_v25 = vld [vmem:[%s2375_s29 + $0x468] sm:$0xff]  ;;  %v455_v2 = vld [vmem:[%s2375_s29 + $0x718] sm:$0xff] }
  0x81   : > { %1970 = vmatprep.subr.bf16.mxu1 %v1969_v29  ;;  %924 = vmatprep.mubr.f32.mxu0 %v215_v35  ;;  %v386_v29 = vld [vmem:[%s2375_s29 + $0x4f0] sm:$0xff]  ;;  %v1959_v33 = vpack.c.bf16 %v369_v25, %v368_v24  ;;  %v473_v6 = vld [vmem:[%s2375_s29 + $0x7a8] sm:$0xff]  ;;  %v424_v12 = vld [vmem:[%s2375_s29 + $0x620] sm:$0xff] }
  0x82   : > { %994 = vmatprep.mubr.f32.mxu1 %v217_v37  ;;  %v1961_v35 = vpack.c.bf16 %v387_v30, %v386_v29  ;;  %v371_v37 = vld [vmem:[%s2375_s29 + $0x478] sm:$0xff]  ;;  %v425_v13 = vld [vmem:[%s2375_s29 + $0x628] sm:$0xff]  ;;  %v456_v14 = vld [vmem:[%s2375_s29 + $0x720] sm:$0xff] }
  0x83   : > { %1940 = vmatpush3.bf16.msra.mxu0 %v1939_v36  ;;  %v370_v36 = vld [vmem:[%s2375_s29 + $0x470] sm:$0xff]  ;;  %v457_v16 = vld [vmem:[%s2375_s29 + $0x728] sm:$0xff]  ;;  %v443_v18 = vld [vmem:[%s2375_s29 + $0x6b8] sm:$0xff] }
  0x84   : > { %1972 = vmatpush3.bf16.msra.mxu1 %v1971_v38  ;;  %1942 = vmatprep.subr.bf16.mxu0 %v1941_v39  ;;  %v402_v38 = vld [vmem:[%s2375_s29 + $0x570] sm:$0xff]  ;;  %v1993_v39 = vpack.c.bf16 %v419_v32, %v418_v31  ;;  %v1963_v45 = vpack.c.bf16 %v371_v37, %v370_v36  ;;  %v475_v20 = vld [vmem:[%s2375_s29 + $0x7b8] sm:$0xff]  ;;  %v444_v29 = vld [vmem:[%s2375_s29 + $0x6c0] sm:$0xff] }
  0x85   : > { %1974 = vmatprep.subr.bf16.mxu1 %v1973_v43  ;;  %v468_v43 = vld [vmem:[%s2375_s29 + $0x780] sm:$0xff]  ;;  %v1995_v46 = vpack.c.bf16 %v403_v40, %v402_v38  ;;  %v442_v17 = vld [vmem:[%s2375_s29 + $0x6b0] sm:$0xff]  ;;  %v427_v25 = vld [vmem:[%s2375_s29 + $0x638] sm:$0xff] }
  0x86   : > { %v474_v19 = vld [vmem:[%s2375_s29 + $0x7b0] sm:$0xff]  ;;  %v459_v28 = vld [vmem:[%s2375_s29 + $0x738] sm:$0xff]  ;;  %v445_v30 = vld [vmem:[%s2375_s29 + $0x6c8] sm:$0xff] }
  0x87   : > { %1944 = vmatpush3.bf16.msra.mxu0 %v1943_v49  ;;  %v421_v49 = vld [vmem:[%s2375_s29 + $0x608] sm:$0xff]  ;;  %v426_v24 = vld [vmem:[%s2375_s29 + $0x630] sm:$0xff]  ;;  %v476_v31 = vld [vmem:[%s2375_s29 + $0x7c0] sm:$0xff] }
  0x88   : > { %1976 = vmatpush3.bf16.msra.mxu1 %v1975_v50  ;;  %1946 = vmatprep.subr.bf16.mxu0 %v1945_v51  ;;  %v452_v50 = vld [vmem:[%s2375_s29 + $0x700] sm:$0xff]  ;;  %v2029_v51 = vpack.c.bf16 %v469_v44, %v468_v43  ;;  %v1999_v58 = vpack.c.bf16 %v421_v49, %v420_v48  ;;  %v458_v26 = vld [vmem:[%s2375_s29 + $0x730] sm:$0xff]  ;;  %v477_v32 = vld [vmem:[%s2375_s29 + $0x7c8] sm:$0xff] }
  0x89   : > { %1978 = vmatprep.subr.bf16.mxu1 %v1977_v55  ;;  %v470_v55 = vld [vmem:[%s2375_s29 + $0x790] sm:$0xff]  ;;  %v2031_v60 = vpack.c.bf16 %v453_v52, %v452_v50  ;;  %v428_v36 = vld [vmem:[%s2375_s29 + $0x640] sm:$0xff]  ;;  %v429_v37 = vld [vmem:[%s2375_s29 + $0x648] sm:$0xff] }
  0x8a   : > { %v2033_v1 = vpack.c.bf16 %v471_v56, %v470_v55  ;;  %v460_v38 = vld [vmem:[%s2375_s29 + $0x740] sm:$0xff]  ;;  %v461_v40 = vld [vmem:[%s2375_s29 + $0x748] sm:$0xff]  ;;  %v446_v41 = vld [vmem:[%s2375_s29 + $0x6d0] sm:$0xff] }
  0x8b   : > { %1948 = vmatpush3.bf16.msra.mxu0 %v1947_v61  ;;  %v2001_v61 = vpack.c.bf16 %v439_v54, %v438_v53  ;;  %v447_v42 = vld [vmem:[%s2375_s29 + $0x6d8] sm:$0xff]  ;;  %v478_v43 = vld [vmem:[%s2375_s29 + $0x7d0] sm:$0xff]  ;;  %v448_v53 = vld [vmem:[%s2375_s29 + $0x6e0] sm:$0xff] }
  0x8c   : > { %1980 = vmatpush3.bf16.msra.mxu1 %v1979_v62  ;;  %1950 = vmatprep.subr.bf16.mxu0 %v1949_v63  ;;  %v422_v62 = vld [vmem:[%s2375_s29 + $0x610] sm:$0xff]  ;;  %v423_v63 = vld [vmem:[%s2375_s29 + $0x618] sm:$0xff]  ;;  %v449_v54 = vld [vmem:[%s2375_s29 + $0x6e8] sm:$0xff] }
  0x8d   : > { %1982 = vmatprep.subr.bf16.mxu1 %v1981_v3  ;;  %v440_v3 = vld [vmem:[%s2375_s29 + $0x6a0] sm:$0xff]  ;;  %v2003_v8 = vpack.c.bf16 %v423_v63, %v422_v62  ;;  %v479_v44 = vld [vmem:[%s2375_s29 + $0x7d8] sm:$0xff]  ;;  %v430_v48 = vld [vmem:[%s2375_s29 + $0x650] sm:$0xff] }
  0x8e   : > { %v431_v49 = vld [vmem:[%s2375_s29 + $0x658] sm:$0xff]  ;;  %v462_v50 = vld [vmem:[%s2375_s29 + $0x750] sm:$0xff]  ;;  %v480_v55 = vld [vmem:[%s2375_s29 + $0x7e0] sm:$0xff] }
  0x8f   : > { %1952 = vmatpush3.bf16.msra.mxu0 %v1951_v9  ;;  %v221_v9 = vld [vmem:[%s2385_s30 + $0x78] sm:$0xff]  ;;  %v463_v52 = vld [vmem:[%s2375_s29 + $0x758] sm:$0xff]  ;;  %v481_v56 = vld [vmem:[%s2375_s29 + $0x7e8] sm:$0xff] }
  0x90   : > { %1984 = vmatpush3.bf16.msra.mxu1 %v1983_v10  ;;  %1954 = vmatprep.subr.bf16.mxu0 %v1953_v11  ;;  %v2035_v10 = vpack.c.bf16 %v455_v2, %v454_v0  ;;  %v2005_v11 = vpack.c.bf16 %v441_v4, %v440_v3  ;;  %v464_v62 = vld [vmem:[%s2375_s29 + $0x760] sm:$0xff]  ;;  %v2053_v63 = vpack.c.bf16 %v481_v56, %v480_v55  ;;  %v465_v0 = vld [vmem:[%s2375_s29 + $0x768] sm:$0xff]  ;;  %v451_v2 = vld [vmem:[%s2375_s29 + $0x6f8] sm:$0xff] }
  0x91   : > { %1986 = vmatprep.subr.bf16.mxu1 %v1985_v15  ;;  %v2037_v15 = vpack.c.bf16 %v473_v6, %v472_v5  ;;  %v482_v3 = vld [vmem:[%s2375_s29 + $0x7f0] sm:$0xff]  ;;  %v483_v4 = vld [vmem:[%s2375_s29 + $0x7f8] sm:$0xff]  ;;  %v2055_v6 = vpack.c.bf16 %v465_v0, %v464_v62 }
  0x92   : > { %v538_v55 = vld [vmem:[%s2375_s29 + $0x9b0] sm:$0xff]  ;;  %v539_v56 = vld [vmem:[%s2375_s29 + $0x9b8] sm:$0xff] }
  0x93   : > { %1956 = vmatpush3.bf16.msra.mxu0 %v1955_v21  ;;  %v2007_v21 = vpack.c.bf16 %v425_v13, %v424_v12  ;;  %v467_v12 = vld [vmem:[%s2375_s29 + $0x778] sm:$0xff]  ;;  %v500_v13 = vld [vmem:[%s2375_s29 + $0x880] sm:$0xff]  ;;  %v522_v62 = vld [vmem:[%s2375_s29 + $0x930] sm:$0xff] }
  0x94   : > { %1988 = vmatpush3.bf16.msra.mxu1 %v1987_v22  ;;  %1958 = vmatprep.subr.bf16.mxu0 %v1957_v23  ;;  %v2039_v22 = vpack.c.bf16 %v457_v16, %v456_v14  ;;  %v2009_v23 = vpack.c.bf16 %v443_v18, %v442_v17  ;;  %v501_v14 = vld [vmem:[%s2375_s29 + $0x888] sm:$0xff]  ;;  %v523_v0 = vld [vmem:[%s2375_s29 + $0x938] sm:$0xff] }
  0x95   : > { %1990 = vmatprep.subr.bf16.mxu1 %v1989_v27  ;;  %v2041_v27 = vpack.c.bf16 %v475_v20, %v474_v19  ;;  %v533_v16 = vld [vmem:[%s2375_s29 + $0x988] sm:$0xff]  ;;  %v2061_v19 = vpack.c.bf16 %v501_v14, %v500_v13  ;;  %v484_v20 = vld [vmem:[%s2375_s29 + $0x800] sm:$0xff]  ;;  %v510_v13 = vld [vmem:[%s2375_s29 + $0x8d0] sm:$0xff] }
  0x96   : > { %v511_v14 = vld [vmem:[%s2375_s29 + $0x8d8] sm:$0xff] }
  0x97   : > { %1960 = vmatpush3.bf16.msra.mxu0 %v1959_v33  ;;  %v2011_v33 = vpack.c.bf16 %v427_v25, %v426_v24  ;;  %v517_v24 = vld [vmem:[%s2375_s29 + $0x908] sm:$0xff]  ;;  %v502_v25 = vld [vmem:[%s2375_s29 + $0x890] sm:$0xff] }
  0x98   : > { %1992 = vmatpush3.bf16.msra.mxu1 %v1991_v34  ;;  %1962 = vmatprep.subr.bf16.mxu0 %v1961_v35  ;;  %v2043_v34 = vpack.c.bf16 %v459_v28, %v458_v26  ;;  %v2013_v35 = vpack.c.bf16 %v445_v30, %v444_v29  ;;  %v503_v26 = vld [vmem:[%s2375_s29 + $0x898] sm:$0xff] }
  0x99   : > { %1994 = vmatprep.subr.bf16.mxu1 %v1993_v39  ;;  %v2045_v39 = vpack.c.bf16 %v477_v32, %v476_v31  ;;  %v535_v28 = vld [vmem:[%s2375_s29 + $0x998] sm:$0xff]  ;;  %v220_v31 = vld [vmem:[%s2385_s30 + $0x70] sm:$0xff] }
  0x9a   : > { %v218_v29 = vld [vmem:[%s2385_s30 + $0x60] sm:$0xff] }
  0x9b   : > { %1964 = vmatpush3.bf16.msra.mxu0 %v1963_v45  ;;  %v2015_v45 = vpack.c.bf16 %v429_v37, %v428_v36  ;;  %v518_v36 = vld [vmem:[%s2375_s29 + $0x910] sm:$0xff] }
  0x9c   : > { %1996 = vmatpush3.bf16.msra.mxu1 %v1995_v46  ;;  %1998 = vmatprep.subr.bf16.mxu0 %v1997_v47  ;;  %v2047_v46 = vpack.c.bf16 %v461_v40, %v460_v38  ;;  %v2017_v47 = vpack.c.bf16 %v447_v42, %v446_v41  ;;  %v519_v38 = vld [vmem:[%s2375_s29 + $0x918] sm:$0xff]  ;;  %v505_v40 = vld [vmem:[%s2375_s29 + $0x8a8] sm:$0xff]  ;;  %v536_v41 = vld [vmem:[%s2375_s29 + $0x9a0] sm:$0xff] }
  0x9d   : > { %2030 = vmatprep.subr.bf16.mxu1 %v2029_v51  ;;  %v2049_v51 = vpack.c.bf16 %v479_v44, %v478_v43  ;;  %v537_v42 = vld [vmem:[%s2375_s29 + $0x9a8] sm:$0xff]  ;;  %v223_v43 = vld [vmem:[%s2385_s30 + $0x88] sm:$0xff] }
  0x9e   : > { %925 = vmatmul.mubr.f32.vlgmr.msra.gmra.mrb[4].mxu0 %v214_v57  ;;  %v2019_v57 = vpack.c.bf16 %v431_v49, %v430_v48  ;;  %v488_v48 = vld [vmem:[%s2375_s29 + $0x820] sm:$0xff]  ;;  %v489_v49 = vld [vmem:[%s2375_s29 + $0x828] sm:$0xff] }
  0x9f   : > { %2000 = vmatpush3.bf16.msra.mxu0 %v1999_v58  ;;  %995 = vmatmul.mubr.f32.vlgmr.msra.gmra.mrb[4].mxu1 %v216_v59  ;;  %v2051_v58 = vpack.c.bf16 %v463_v52, %v462_v50  ;;  %v2021_v59 = vpack.c.bf16 %v449_v54, %v448_v53  ;;  %v520_v50 = vld [vmem:[%s2375_s29 + $0x920] sm:$0xff]  ;;  %v521_v52 = vld [vmem:[%s2375_s29 + $0x928] sm:$0xff]  ;;  %v506_v53 = vld [vmem:[%s2375_s29 + $0x8b0] sm:$0xff] }
  0xa0   : > { %2032 = vmatpush3.bf16.msra.mxu1 %v2031_v60  ;;  %2002 = vmatprep.subr.bf16.mxu0 %v2001_v61  ;;  %v432_v60 = vld [vmem:[%s2375_s29 + $0x660] sm:$0xff]  ;;  %v433_v61 = vld [vmem:[%s2375_s29 + $0x668] sm:$0xff]  ;;  %v507_v54 = vld [vmem:[%s2375_s29 + $0x8b8] sm:$0xff] }
  0xa1   : > { %2034 = vmatprep.subr.bf16.mxu1 %v2033_v1  ;;  %1064 = vmatprep.mubr.f32.mxu0 %v219_v7  ;;  %v450_v1 = vld [vmem:[%s2375_s29 + $0x6f0] sm:$0xff]  ;;  %v2023_v5 = vpack.c.bf16 %v433_v61, %v432_v60  ;;  %v491_v61 = vld [vmem:[%s2375_s29 + $0x838] sm:$0xff] }
  0xa2   : > { %1134 = vmatprep.mubr.f32.mxu1 %v221_v9  ;;  %v2025_v7 = vpack.c.bf16 %v451_v2, %v450_v1  ;;  %v435_v9 = vld [vmem:[%s2375_s29 + $0x678] sm:$0xff]  ;;  %v490_v60 = vld [vmem:[%s2375_s29 + $0x830] sm:$0xff]  ;;  %v508_v1 = vld [vmem:[%s2375_s29 + $0x8c0] sm:$0xff] }
  0xa3   : > { %2004 = vmatpush3.bf16.msra.mxu0 %v2003_v8  ;;  %v434_v8 = vld [vmem:[%s2375_s29 + $0x670] sm:$0xff]  ;;  %v509_v2 = vld [vmem:[%s2375_s29 + $0x8c8] sm:$0xff] }
  0xa4   : > { %2036 = vmatpush3.bf16.msra.mxu1 %v2035_v10  ;;  %2006 = vmatprep.subr.bf16.mxu0 %v2005_v11  ;;  %v466_v10 = vld [vmem:[%s2375_s29 + $0x770] sm:$0xff]  ;;  %v2057_v11 = vpack.c.bf16 %v483_v4, %v482_v3  ;;  %v2027_v17 = vpack.c.bf16 %v435_v9, %v434_v8  ;;  %v540_v3 = vld [vmem:[%s2375_s29 + $0x9c0] sm:$0xff]  ;;  %v541_v4 = vld [vmem:[%s2375_s29 + $0x9c8] sm:$0xff] }
  0xa5   : > { %2038 = vmatprep.subr.bf16.mxu1 %v2037_v15  ;;  %v532_v15 = vld [vmem:[%s2375_s29 + $0x980] sm:$0xff]  ;;  %v2059_v18 = vpack.c.bf16 %v467_v12, %v466_v10  ;;  %v493_v9 = vld [vmem:[%s2375_s29 + $0x848] sm:$0xff] }
  0xa6   : > { %v492_v8 = vld [vmem:[%s2375_s29 + $0x840] sm:$0xff]  ;;  %v525_v12 = vld [vmem:[%s2375_s29 + $0x948] sm:$0xff] }
  0xa7   : > { %2008 = vmatpush3.bf16.msra.mxu0 %v2007_v21  ;;  %v485_v21 = vld [vmem:[%s2375_s29 + $0x808] sm:$0xff]  ;;  %v524_v10 = vld [vmem:[%s2375_s29 + $0x940] sm:$0xff] }
  0xa8   : > { %2040 = vmatpush3.bf16.msra.mxu1 %v2039_v22  ;;  %2010 = vmatprep.subr.bf16.mxu0 %v2009_v23  ;;  %v516_v22 = vld [vmem:[%s2375_s29 + $0x900] sm:$0xff]  ;;  %v2093_v23 = vpack.c.bf16 %v533_v16, %v532_v15  ;;  %v2063_v30 = vpack.c.bf16 %v485_v21, %v484_v20  ;;  %v542_v15 = vld [vmem:[%s2375_s29 + $0x9d0] sm:$0xff]  ;;  %v543_v16 = vld [vmem:[%s2375_s29 + $0x9d8] sm:$0xff] }
  0xa9   : > { %2042 = vmatprep.subr.bf16.mxu1 %v2041_v27  ;;  %v534_v27 = vld [vmem:[%s2375_s29 + $0x990] sm:$0xff]  ;;  %v2095_v32 = vpack.c.bf16 %v517_v24, %v516_v22  ;;  %v495_v21 = vld [vmem:[%s2375_s29 + $0x858] sm:$0xff] }
  0xaa   : > { %v2097_v37 = vpack.c.bf16 %v535_v28, %v534_v27  ;;  %v494_v20 = vld [vmem:[%s2375_s29 + $0x850] sm:$0xff]  ;;  %v527_v24 = vld [vmem:[%s2375_s29 + $0x958] sm:$0xff]  ;;  %v544_v27 = vld [vmem:[%s2375_s29 + $0x9e0] sm:$0xff] }
  0xab   : > { %2012 = vmatpush3.bf16.msra.mxu0 %v2011_v33  ;;  %v2065_v33 = vpack.c.bf16 %v503_v26, %v502_v25  ;;  %v526_v22 = vld [vmem:[%s2375_s29 + $0x950] sm:$0xff]  ;;  %v512_v25 = vld [vmem:[%s2375_s29 + $0x8e0] sm:$0xff]  ;;  %v513_v26 = vld [vmem:[%s2375_s29 + $0x8e8] sm:$0xff] }
  0xac   : > { %2044 = vmatpush3.bf16.msra.mxu1 %v2043_v34  ;;  %2014 = vmatprep.subr.bf16.mxu0 %v2013_v35  ;;  %v486_v34 = vld [vmem:[%s2375_s29 + $0x810] sm:$0xff]  ;;  %v487_v35 = vld [vmem:[%s2375_s29 + $0x818] sm:$0xff]  ;;  %v545_v28 = vld [vmem:[%s2375_s29 + $0x9e8] sm:$0xff] }
  0xad   : > { %2046 = vmatprep.subr.bf16.mxu1 %v2045_v39  ;;  %v504_v39 = vld [vmem:[%s2375_s29 + $0x8a0] sm:$0xff]  ;;  %v2067_v44 = vpack.c.bf16 %v487_v35, %v486_v34  ;;  %v2117_v35 = vpack.c.bf16 %v545_v28, %v544_v27 }
  0xae   : > { %v528_v34 = vld [vmem:[%s2375_s29 + $0x960] sm:$0xff] }
  0xaf   : > { %2016 = vmatpush3.bf16.msra.mxu0 %v2015_v45  ;;  %v225_v45 = vld [vmem:[%s2385_s30 + $0x98] sm:$0xff] }
  0xb0   : > { %2048 = vmatpush3.bf16.msra.mxu1 %v2047_v46  ;;  %2018 = vmatprep.subr.bf16.mxu0 %v2017_v47  ;;  %v2099_v46 = vpack.c.bf16 %v519_v38, %v518_v36  ;;  %v2069_v47 = vpack.c.bf16 %v505_v40, %v504_v39  ;;  %v529_v36 = vld [vmem:[%s2375_s29 + $0x968] sm:$0xff]  ;;  %v515_v38 = vld [vmem:[%s2375_s29 + $0x8f8] sm:$0xff]  ;;  %v546_v39 = vld [vmem:[%s2375_s29 + $0x9f0] sm:$0xff] }
  0xb1   : > { %2050 = vmatprep.subr.bf16.mxu1 %v2049_v51  ;;  %v2101_v51 = vpack.c.bf16 %v537_v42, %v536_v41  ;;  %v547_v40 = vld [vmem:[%s2375_s29 + $0x9f8] sm:$0xff]  ;;  %v2119_v42 = vpack.c.bf16 %v529_v36, %v528_v34 }
  0xb2   : > { %v563_v36 = vld [vmem:[%s2375_s29 + $0xa78] sm:$0xff] }
  0xb3   : > { %2020 = vmatpush3.bf16.msra.mxu0 %v2019_v57  ;;  %v2071_v57 = vpack.c.bf16 %v489_v49, %v488_v48  ;;  %v531_v48 = vld [vmem:[%s2375_s29 + $0x978] sm:$0xff]  ;;  %v564_v49 = vld [vmem:[%s2375_s29 + $0xa80] sm:$0xff] }
  0xb4   : > { %2052 = vmatpush3.bf16.msra.mxu1 %v2051_v58  ;;  %2022 = vmatprep.subr.bf16.mxu0 %v2021_v59  ;;  %v2103_v58 = vpack.c.bf16 %v521_v52, %v520_v50  ;;  %v2073_v59 = vpack.c.bf16 %v507_v54, %v506_v53  ;;  %v565_v50 = vld [vmem:[%s2375_s29 + $0xa88] sm:$0xff]  ;;  %v548_v54 = vld [vmem:[%s2375_s29 + $0xa00] sm:$0xff] }
  0xb5   : > { %2054 = vmatprep.subr.bf16.mxu1 %v2053_v63  ;;  %v2105_v63 = vpack.c.bf16 %v539_v56, %v538_v55  ;;  %v2125_v53 = vpack.c.bf16 %v565_v50, %v564_v49  ;;  %v549_v55 = vld [vmem:[%s2375_s29 + $0xa08] sm:$0xff]  ;;  %v566_v56 = vld [vmem:[%s2375_s29 + $0xa90] sm:$0xff] }
  0xb7   : > { %2024 = vmatpush3.bf16.msra.mxu0 %v2023_v5  ;;  %v2075_v5 = vpack.c.bf16 %v491_v61, %v490_v60  ;;  %v224_v60 = vld [vmem:[%s2385_s30 + $0x90] sm:$0xff] }
  0xb8   : > { %2056 = vmatpush3.bf16.msra.mxu1 %v2055_v6  ;;  %2026 = vmatprep.subr.bf16.mxu0 %v2025_v7  ;;  %v2107_v6 = vpack.c.bf16 %v523_v0, %v522_v62  ;;  %v2077_v7 = vpack.c.bf16 %v509_v2, %v508_v1  ;;  %v550_v62 = vld [vmem:[%s2375_s29 + $0xa10] sm:$0xff]  ;;  %v568_v0 = vld [vmem:[%s2375_s29 + $0xaa0] sm:$0xff]  ;;  %v569_v1 = vld [vmem:[%s2375_s29 + $0xaa8] sm:$0xff] }
  0xb9   : > { %2058 = vmatprep.subr.bf16.mxu1 %v2057_v11  ;;  %v2109_v11 = vpack.c.bf16 %v541_v4, %v540_v3  ;;  %v227_v2 = vld [vmem:[%s2385_s30 + $0xa8] sm:$0xff]  ;;  %v2133_v4 = vpack.c.bf16 %v569_v1, %v568_v0 }
  0xbb   : > { %2028 = vmatpush3.bf16.msra.mxu0 %v2027_v17  ;;  %v2079_v17 = vpack.c.bf16 %v493_v9, %v492_v8  ;;  %v571_v8 = vld [vmem:[%s2375_s29 + $0xab8] sm:$0xff] }
  0xbc   : > { %2060 = vmatpush3.bf16.msra.mxu1 %v2059_v18  ;;  %2062 = vmatprep.subr.bf16.mxu0 %v2061_v19  ;;  %v2111_v18 = vpack.c.bf16 %v525_v12, %v524_v10  ;;  %v2081_v19 = vpack.c.bf16 %v511_v14, %v510_v13  ;;  %v555_v12 = vld [vmem:[%s2375_s29 + $0xa38] sm:$0xff]  ;;  %v572_v13 = vld [vmem:[%s2375_s29 + $0xac0] sm:$0xff]  ;;  %v573_v14 = vld [vmem:[%s2375_s29 + $0xac8] sm:$0xff] }
  0xbd   : > { %2094 = vmatprep.subr.bf16.mxu1 %v2093_v23  ;;  %v2113_v23 = vpack.c.bf16 %v543_v16, %v542_v15  ;;  %v2141_v16 = vpack.c.bf16 %v573_v14, %v572_v13 }
  0xbe   : > { %1065 = vmatmul.mubr.f32.vlgmr.msra.gmra.mrb[6].mxu0 %v218_v29  ;;  %v2083_v29 = vpack.c.bf16 %v495_v21, %v494_v20  ;;  %v575_v20 = vld [vmem:[%s2375_s29 + $0xad8] sm:$0xff] }
  0xbf   : > { %2064 = vmatpush3.bf16.msra.mxu0 %v2063_v30  ;;  %1135 = vmatmul.mubr.f32.vlgmr.msra.gmra.mrb[6].mxu1 %v220_v31  ;;  %v2115_v30 = vpack.c.bf16 %v527_v24, %v526_v22  ;;  %v2085_v31 = vpack.c.bf16 %v513_v26, %v512_v25  ;;  %v559_v24 = vld [vmem:[%s2375_s29 + $0xa58] sm:$0xff]  ;;  %v576_v25 = vld [vmem:[%s2375_s29 + $0xae0] sm:$0xff]  ;;  %v577_v26 = vld [vmem:[%s2375_s29 + $0xae8] sm:$0xff] }
  0xc0   : > { %2096 = vmatpush3.bf16.msra.mxu1 %v2095_v32  ;;  %2066 = vmatprep.subr.bf16.mxu0 %v2065_v33  ;;  %v496_v32 = vld [vmem:[%s2375_s29 + $0x860] sm:$0xff]  ;;  %v497_v33 = vld [vmem:[%s2375_s29 + $0x868] sm:$0xff]  ;;  %v2149_v28 = vpack.c.bf16 %v577_v26, %v576_v25 }
  0xc1   : > { %2098 = vmatprep.subr.bf16.mxu1 %v2097_v37  ;;  %1204 = vmatprep.mubr.f32.mxu0 %v223_v43  ;;  %v514_v37 = vld [vmem:[%s2375_s29 + $0x8f0] sm:$0xff]  ;;  %v2087_v41 = vpack.c.bf16 %v497_v33, %v496_v32  ;;  %v579_v32 = vld [vmem:[%s2375_s29 + $0xaf8] sm:$0xff] }
  0xc2   : > { %1274 = vmatprep.mubr.f32.mxu1 %v225_v45  ;;  %v2089_v43 = vpack.c.bf16 %v515_v38, %v514_v37  ;;  %v499_v45 = vld [vmem:[%s2375_s29 + $0x878] sm:$0xff] }
  0xc3   : > { %2068 = vmatpush3.bf16.msra.mxu0 %v2067_v44  ;;  %v498_v44 = vld [vmem:[%s2375_s29 + $0x870] sm:$0xff]  ;;  %v226_v38 = vld [vmem:[%s2385_s30 + $0xa0] sm:$0xff] }
  0xc4   : > { %2100 = vmatpush3.bf16.msra.mxu1 %v2099_v46  ;;  %2070 = vmatprep.subr.bf16.mxu0 %v2069_v47  ;;  %v530_v46 = vld [vmem:[%s2375_s29 + $0x970] sm:$0xff]  ;;  %v2121_v47 = vpack.c.bf16 %v547_v40, %v546_v39 }
  0xc5   : > { %2102 = vmatprep.subr.bf16.mxu1 %v2101_v51  ;;  %v2091_v51 = vpack.c.bf16 %v499_v45, %v498_v44  ;;  %v2123_v52 = vpack.c.bf16 %v531_v48, %v530_v46 }
  0xc7   : > { %2072 = vmatpush3.bf16.msra.mxu0 %v2071_v57  ;;  %v567_v57 = vld [vmem:[%s2375_s29 + $0xa98] sm:$0xff] }
  0xc8   : > { %2104 = vmatpush3.bf16.msra.mxu1 %v2103_v58  ;;  %2074 = vmatprep.subr.bf16.mxu0 %v2073_v59  ;;  %v222_v58 = vld [vmem:[%s2385_s30 + $0x80] sm:$0xff]  ;;  %v2127_v59 = vpack.c.bf16 %v549_v55, %v548_v54  ;;  %v2129_v61 = vpack.c.bf16 %v567_v57, %v566_v56 }
  0xc9   : > { %2106 = vmatprep.subr.bf16.mxu1 %v2105_v63  ;;  %v551_v63 = vld [vmem:[%s2375_s29 + $0xa18] sm:$0xff] }
  0xca   : > { %v2131_v3 = vpack.c.bf16 %v551_v63, %v550_v62 }
  0xcb   : > { %2076 = vmatpush3.bf16.msra.mxu0 %v2075_v5  ;;  %v552_v5 = vld [vmem:[%s2375_s29 + $0xa20] sm:$0xff] }
  0xcc   : > { %2108 = vmatpush3.bf16.msra.mxu1 %v2107_v6  ;;  %2078 = vmatprep.subr.bf16.mxu0 %v2077_v7  ;;  %v553_v6 = vld [vmem:[%s2375_s29 + $0xa28] sm:$0xff]  ;;  %v570_v7 = vld [vmem:[%s2375_s29 + $0xab0] sm:$0xff] }
  0xcd   : > { %2110 = vmatprep.subr.bf16.mxu1 %v2109_v11  ;;  %v2135_v9 = vpack.c.bf16 %v553_v6, %v552_v5  ;;  %v2137_v10 = vpack.c.bf16 %v571_v8, %v570_v7  ;;  %v554_v11 = vld [vmem:[%s2375_s29 + $0xa30] sm:$0xff] }
  0xce   : > { %v2139_v15 = vpack.c.bf16 %v555_v12, %v554_v11 }
  0xcf   : > { %2080 = vmatpush3.bf16.msra.mxu0 %v2079_v17  ;;  %v556_v17 = vld [vmem:[%s2375_s29 + $0xa40] sm:$0xff] }
  0xd0   : > { %2112 = vmatpush3.bf16.msra.mxu1 %v2111_v18  ;;  %2082 = vmatprep.subr.bf16.mxu0 %v2081_v19  ;;  %v557_v18 = vld [vmem:[%s2375_s29 + $0xa48] sm:$0xff]  ;;  %v574_v19 = vld [vmem:[%s2375_s29 + $0xad0] sm:$0xff] }
  0xd1   : > { %2114 = vmatprep.subr.bf16.mxu1 %v2113_v23  ;;  %v2143_v21 = vpack.c.bf16 %v557_v18, %v556_v17  ;;  %v2145_v22 = vpack.c.bf16 %v575_v20, %v574_v19  ;;  %v558_v23 = vld [vmem:[%s2375_s29 + $0xa50] sm:$0xff]  ;;  %v205_v17 = vld [vmem:[#allocation2] sm:$0xff] }
  0xd2   : > { %v2147_v27 = vpack.c.bf16 %v559_v24, %v558_v23 }
  0xd3   : > { %2084 = vmatpush3.bf16.msra.mxu0 %v2083_v29  ;;  %v560_v29 = vld [vmem:[%s2375_s29 + $0xa60] sm:$0xff] }
  0xd4   : > { %2116 = vmatpush3.bf16.msra.mxu1 %v2115_v30  ;;  %2086 = vmatprep.subr.bf16.mxu0 %v2085_v31  ;;  %v561_v30 = vld [vmem:[%s2375_s29 + $0xa68] sm:$0xff]  ;;  %v578_v31 = vld [vmem:[%s2375_s29 + $0xaf0] sm:$0xff] }
  0xd5   : > { %2118 = vmatprep.subr.bf16.mxu1 %v2117_v35  ;;  %v2151_v33 = vpack.c.bf16 %v561_v30, %v560_v29  ;;  %v2153_v34 = vpack.c.bf16 %v579_v32, %v578_v31  ;;  %v562_v35 = vld [vmem:[%s2375_s29 + $0xa70] sm:$0xff] }
  0xd6   : > { %v2155_v37 = vpack.c.bf16 %v563_v36, %v562_v35 }
  0xd7   : > { %2088 = vmatpush3.bf16.msra.mxu0 %v2087_v41 }
  0xd8   : > { %2120 = vmatpush3.bf16.msra.mxu1 %v2119_v42  ;;  %2090 = vmatprep.subr.bf16.mxu0 %v2089_v43 }
  0xd9   : > { %2122 = vmatprep.subr.bf16.mxu1 %v2121_v47 }
  0xdb   : > { %2092 = vmatpush3.bf16.msra.mxu0 %v2091_v51 }
  0xdc   : > { %2124 = vmatpush3.bf16.msra.mxu1 %v2123_v52  ;;  %2126 = vmatprep.subr.bf16.mxu0 %v2125_v53 }
  0xde   : > { %1205 = vmatmul.mubr.f32.vlgmr.msra.gmra.mrb[8].mxu0 %v222_v58 }
  0xdf   : > { %2128 = vmatpush3.bf16.msra.mxu0 %v2127_v59  ;;  %1275 = vmatmul.mubr.f32.vlgmr.msra.gmra.mrb[8].mxu1 %v224_v60 }
  0xe0   : > { %2130 = vmatprep.subr.bf16.mxu0 %v2129_v61  ;;  %1344 = vmatprep.mubr.f32.mxu0 %v227_v2 }
  0xe3   : > { %2132 = vmatpush3.bf16.msra.mxu0 %v2131_v3 }
  0xe4   : > { %2134 = vmatprep.subr.bf16.mxu0 %v2133_v4 }
  0xe7   : > { %2136 = vmatpush3.bf16.msra.mxu0 %v2135_v9 }
  0xe8   : > { %2138 = vmatprep.subr.bf16.mxu0 %v2137_v10 }
  0xeb   : > { %2140 = vmatpush3.bf16.msra.mxu0 %v2139_v15 }
  0xec   : > { %2142 = vmatprep.subr.bf16.mxu0 %v2141_v16 }
  0xef   : > { %2144 = vmatpush3.bf16.msra.mxu0 %v2143_v21 }
  0xf0   : > { %2146 = vmatprep.subr.bf16.mxu0 %v2145_v22 }
  0xf3   : > { %2148 = vmatpush3.bf16.msra.mxu0 %v2147_v27 }
  0xf4   : > { %2150 = vmatprep.subr.bf16.mxu0 %v2149_v28 }
  0xf7   : > { %2152 = vmatpush3.bf16.msra.mxu0 %v2151_v33 }
  0xf8   : > { %2154 = vmatprep.subr.bf16.mxu0 %v2153_v34 }
  0xfb   : > { %2156 = vmatpush3.bf16.msra.mxu0 %v2155_v37 }
  0xfe   : > { %1345 = vmatmul.mubr.f32.vlgmr.msra.gmra.mrb[10].mxu0 %v226_v38 }
 0x131   : > { %v1452_v39 = vpop.f32.mrb[0].mxu0 }
 0x132   : > { %v1487_v40 = vpop.f32.mrb[0].mxu1  ;;  %v1453_v41 = vpop.f32.mrb[1].mxu0 }
 0x133   : > { %v1454_v42 = vadd.f32 %v1453_v41, %v1452_v39  ;;  %v1488_v43 = vpop.f32.mrb[1].mxu1 }
 0x134   : > { %v1489_v44 = vadd.f32 %v1488_v43, %v1487_v40 }
 0x136   : > { %v717_v45 = vadd.f32 %v1489_v44, %v1454_v42 }
 0x151   : > { %v1522_v46 = vpop.f32.mrb[2].mxu0 }
 0x152   : > { %v1523_v47 = vpop.f32.mrb[3].mxu0  ;;  %v1557_v48 = vpop.f32.mrb[2].mxu1 }
 0x153   : > { %v1524_v49 = vadd.f32 %v1523_v47, %v1522_v46  ;;  %v1558_v50 = vpop.f32.mrb[3].mxu1 }
 0x154   : > { %v1559_v51 = vadd.f32 %v1558_v50, %v1557_v48 }
 0x155   : > { %v787_v52 = vadd.f32 %v1524_v49, %v717_v45 }
 0x157   : > { %v857_v53 = vadd.f32 %v1559_v51, %v787_v52 }
 0x171   : > { %v1592_v54 = vpop.f32.mrb[4].mxu0 }
 0x172   : > { %v1593_v55 = vpop.f32.mrb[5].mxu0  ;;  %v1627_v56 = vpop.f32.mrb[4].mxu1 }
 0x173   : > { %v1594_v57 = vadd.f32 %v1593_v55, %v1592_v54  ;;  %v1628_v58 = vpop.f32.mrb[5].mxu1 }
 0x174   : > { %v1629_v59 = vadd.f32 %v1628_v58, %v1627_v56 }
 0x175   : > { %v927_v60 = vadd.f32 %v1594_v57, %v857_v53 }
 0x177   : > { %v997_v61 = vadd.f32 %v1629_v59, %v927_v60 }
 0x191   : > { %v1662_v62 = vpop.f32.mrb[6].mxu0 }
 0x192   : > { %v1663_v63 = vpop.f32.mrb[7].mxu0  ;;  %v1697_v0 = vpop.f32.mrb[6].mxu1 }
 0x193   : > { %v1664_v1 = vadd.f32 %v1663_v63, %v1662_v62  ;;  %v1698_v2 = vpop.f32.mrb[7].mxu1 }
 0x194   : > { %v1699_v3 = vadd.f32 %v1698_v2, %v1697_v0 }
 0x195   : > { %v1067_v4 = vadd.f32 %v1664_v1, %v997_v61 }
 0x197   : > { %v1137_v5 = vadd.f32 %v1699_v3, %v1067_v4 }
 0x1b1   : > { %v1732_v6 = vpop.f32.mrb[8].mxu0 }
 0x1b2   : > { %v1733_v7 = vpop.f32.mrb[9].mxu0  ;;  %v1767_v8 = vpop.f32.mrb[8].mxu1 }
 0x1b3   : > { %v1734_v9 = vadd.f32 %v1733_v7, %v1732_v6  ;;  %v1768_v10 = vpop.f32.mrb[9].mxu1 }
 0x1b4   : > { %v1769_v11 = vadd.f32 %v1768_v10, %v1767_v8 }
 0x1b5   : > { %v1207_v12 = vadd.f32 %v1734_v9, %v1137_v5 }
 0x1b7   : > { %v1277_v13 = vadd.f32 %v1769_v11, %v1207_v12 }
 0x1d1   : > { %v1802_v14 = vpop.f32.mrb[10].mxu0 }
 0x1d2   : > { %v1803_v15 = vpop.f32.mrb[11].mxu0 }
 0x1d3   : > { %v1804_v16 = vadd.f32 %v1803_v15, %v1802_v14  ;;  %1355 = sbr.rel (%p1416_p7) target bundleno = 482 (0x1e2), region = 44 }
 0x1d5   : > { %v1347_v18 = vadd.f32 %v1804_v16, %v1277_v13 }
 0x1d7   : > { %v1350_v19 = vadd.f32 %v1347_v18, %v205_v17 }
 0x1d9   : > { %1351 = vst [vmem:[#allocation2] sm:$0xff] %v1350_v19 }
 0x1e0   : > { %v1356_v20 = vld [vmem:[#allocation2] sm:$0xff] }
 0x1e1   : > { %1357 = vst [vmem:[%s2785_s3] sm:$0xff] %v1356_v20 }
 0x1e2 PF: > { %p13_p4 = scmp.ge.s32.totalorder %s2311_s17, 11   ;;  %s2789_s12 = smov %s2256_s13 }
 0x1e3   : > { %s2790_s13 = smov %s2260_s14  ;;  %s2791_s14 = smov %s2321_s20 }
 0x1e4   : > { %s2792_s15 = smov %s2311_s17  ;;  %15 = sbr.rel (!%p13_p4) target bundleno = 3 (0x3), region = 79 }
 0x1eb   :  { %1369 = vsyncpa [#allocation4], 1 }
 0x1ec   :  { %1371 = vsyncpa [#allocation4 + $0x1], 1 }

// kernel: _forward.5
= control target key start
LH: loop header
LB: loop body
LE: loop exit
PB: predicated region body
PF: predicated region fallthrough
CT: control target
= control target key end

     0   :  { %s200_s0 = inlined_call_operand.vmem [shape: f32[32,256], index: 0, kind: input, shape index: {}]   ;;  %s201_s1 = inlined_call_operand.vmem [shape: f32[32,256], index: 1, kind: input, shape index: {}]   ;;  %s202_s2 = inlined_call_operand.hbm [shape: f32[1,1], index: 2, kind: output, shape index: {}]  }
   0x1   :  { %v20_v0 = vld [vmem:[%s200_s0] sm:$0xff]  ;;  %v21_v1 = vld [vmem:[%s200_s0 + $0x8] sm:$0xff]  ;;  %v22_v2 = vld [vmem:[%s200_s0 + $0x10] sm:$0xff] }
   0x2   :  { %v23_v3 = vld [vmem:[%s200_s0 + $0x18] sm:$0xff]  ;;  %v24_v4 = vld [vmem:[%s200_s0 + $0x20] sm:$0xff]  ;;  %v29_v6 = vld [vmem:[%s201_s1 + $0x8] sm:$0xff] }
   0x3   :  { %v28_v5 = vld [vmem:[%s201_s1] sm:$0xff]  ;;  %v30_v7 = vld [vmem:[%s201_s1 + $0x10] sm:$0xff]  ;;  %v31_v8 = vld [vmem:[%s201_s1 + $0x18] sm:$0xff]  ;;  %v37_v11 = vsub.f32 %v21_v1, %v29_v6 }
   0x4   :  { %v36_v9 = vsub.f32 %v20_v0, %v28_v5  ;;  %v32_v10 = vld [vmem:[%s201_s1 + $0x20] sm:$0xff]  ;;  %v38_v12 = vsub.f32 %v22_v2, %v30_v7  ;;  %v39_v13 = vsub.f32 %v23_v3, %v31_v8  ;;  %v25_v14 = vld [vmem:[%s200_s0 + $0x28] sm:$0xff] }
   0x5   :  { %v33_v15 = vld [vmem:[%s201_s1 + $0x28] sm:$0xff] }
   0x6   :  { %v44_v16 = vand.u32 2147483647, %v36_v9 }
   0x7   :  { %7 = vsyncpa [#allocation4], 0  ;;  %v40_v17 = vsub.f32 %v24_v4, %v32_v10  ;;  %v45_v18 = vand.u32 2147483647, %v37_v11  ;;  %v46_v19 = vand.u32 2147483647, %v38_v12  ;;  %v41_v22 = vsub.f32 %v25_v14, %v33_v15 }
   0x8   :  { %v26_v20 = vld [vmem:[%s200_s0 + $0x30] sm:$0xff]  ;;  %v47_v23 = vand.u32 2147483647, %v39_v13  ;;  %v27_v25 = vld [vmem:[%s200_s0 + $0x38] sm:$0xff]  ;;  %vm18_vm0 = vcmask 0   ;;  %v120_v39 = vmov 0.0  }
   0x9   :  { %v34_v21 = vld [vmem:[%s201_s1 + $0x30] sm:$0xff]  ;;  %v53_v24 = vadd.f32 %v45_v18, %v44_v16  ;;  %v35_v26 = vld [vmem:[%s201_s1 + $0x38] sm:$0xff]  ;;  %v48_v28 = vand.u32 2147483647, %v40_v17  ;;  %v49_v31 = vand.u32 2147483647, %v41_v22 }
   0xa   :  { %v42_v27 = vsub.f32 %v26_v20, %v34_v21  ;;  %v43_v30 = vsub.f32 %v27_v25, %v35_v26  ;;  %19 = vst.msk [vmem:[#allocation2] sm:$0x1] %vm18_vm0, %v120_v39  ;;  %s121_s1 = smov [#allocation3]  }
   0xb   :  { %v54_v29 = vadd.f32 %v53_v24, %v46_v19  ;;  %s84_s13 = sshll.u32 %s121_s1, 4  ;;  %s85_s13 = int_to_ptr.vmem [resolvable:$true] %s84_s13 }
   0xc   :  { %v50_v33 = vand.u32 2147483647, %v42_v27  ;;  %v51_v35 = vand.u32 2147483647, %v43_v30  ;;  %s96_s14 = scalar_lea.vmem %s85_s13, 16  ;;  %s100_s15 = scalar_lea.vmem %s85_s13, 32 }
   0xd   :  { %v55_v32 = vadd.f32 %v54_v29, %v47_v23  ;;  %p97_p0 = scmp.ne.s32.totalorder %s85_s13, %s96_s14  ;;  %p101_p1 = scmp.lt.s32.totalorder %s85_s13, %s85_s13 }
   0xe   :  { %p102_p2 = scmp.lt.s32.totalorder %s100_s15, %s96_s14 }
   0xf   :  { %v56_v34 = vadd.f32 %v55_v32, %v48_v28 }
  0x10   :  { %p103_p3 = por %p102_p2, %p101_p1 }
  0x11   :  { %v57_v36 = vadd.f32 %v56_v34, %v49_v31  ;;  %v52_v47 = vld [vmem:[#allocation2] sm:$0x1] }
  0x12   :  { %p104_p4 = pnand %p103_p3, %p97_p0 }
  0x13   :  { %v58_v37 = vadd.f32 %v57_v36, %v50_v33 }
  0x15   :  { %v59_v38 = vadd.f32 %v58_v37, %v51_v35 }
  0x17   :  { %60 = vadd.xlane.f32.xlu0 %v59_v38 }
  0xa4   :  { %v61_v40 = vpop.xlane.xlu0 %60 }
  0xa5   :  { %v62_v41 = vrot.slane %v61_v40, 4 }
  0xa7   :  { %v63_v42 = vadd.f32 %v62_v41, %v61_v40 }
  0xa9   :  { %v64_v43 = vrot.slane %v63_v42, 2 }
  0xab   :  { %v65_v44 = vadd.f32 %v64_v43, %v63_v42 }
  0xad   :  { %v66_v45 = vrot.slane %v65_v44, 1 }
  0xaf   :  { %v67_v46 = vadd.f32 %v66_v45, %v65_v44 }
  0xb1   :  { %92 = vpush %v67_v46 }
  0xe2   :  { %s93_s0 = spop %92 }
  0xe3   :  { %v69_v48 = vstv %s93_s0 }
  0xe4   :  { %v70_v49 = vadd.f32 %v69_v48, %v52_v47 }
  0xe6   :  { %72 = vst.msk [vmem:[#allocation2] sm:$0x1] %vm18_vm0, %v70_v49 }
  0xed   :  { %v75_v50 = vld [vmem:[#allocation2] sm:$0x1] }
  0xee   :  { %v76_v51 = vmul.f32 0.00012207031, %v75_v50 }
  0xf0   :  { %77 = vst.msk [vmem:[#allocation3] sm:$0x1] %vm18_vm0, %v76_v51 }
  0xf1   :  { %107 = shalt.err (!%p104_p4)
}
  0xf2   :  { %s108_s18 = scalar_lea.hbm %s202_s2, 16 }
  0xf3   :  { %p109_p5 = scmp.ne.s32.totalorder %s202_s2, %s108_s18  ;;  %p112_p6 = scmp.lt.u32.totalorder %s108_s18, %s202_s2 }
  0xf5   :  { %p114_p7 = pnand %p112_p6, %p109_p5 }
  0xf7   :  { %117 = shalt.err (!%p114_p7)
}
  0xf8   :  { %87 = dma.vmem_to_hbm [thread:$0]  %s85_s13, 16, %s202_s2, [#allocation4]  }
  0xf9   :  { %118 = dma.done.wait [#allocation4], 16  }
  0xfa   :  { %119 = vsyncadd [#allocation4], 4294967280 }
  0xfb   :  { %91 = vsyncpa [#allocation4], 1 }

</bundles_post_ra>
